<compile_context>
chip_gen: v5e
topology: v5e:2x2
jax: 0.10.0
libtpu: 0.0.40
codegen_flags: <defaults>
</compile_context>

<pallas_src>
import functools

import jax
import jax.numpy as jnp
from jax.experimental import pallas as pl
from jax.experimental.pallas import tpu as pltpu

_LANE = 128
_A_PAD_MULTIPLE = 256                         # node-dim padding for A_hat
_VMEM_LIMIT_BYTES = 48 * 1024 * 1024          # <= v7x's 64 MiB physical VMEM
_RESIDENT_BUDGET_BYTES = 32 * 1024 * 1024     # incl. x2 input double-buffering


def _cdiv(a, b):
    return -(-a // b)


def _round_up(x, m):
    return _cdiv(x, m) * m


def _choose_tiles(n_pad):
    """Row / contraction tile sizes for streaming the (n_pad, n_pad) A_hat.

    n_pad is a multiple of 256, so 256-aligned tiles always divide it exactly.
    tm <= 512 keeps >=2 row tiles whenever the Pallas path is used (n >= 1024),
    which feeds both v7x TensorCores at no cost to single-core v5e/v6e.
    tk targets 2048 so each grid step DMAs >= 1-2 MiB of A and the ~0.35us
    per-step overhead is negligible.
    """
    tm = 512 if n_pad % 512 == 0 else 256
    tm = min(tm, n_pad)
    tk = 256
    for cand in (2048, 1024, 512):
        if n_pad % cand == 0:
            tk = cand
            break
    tk = min(tk, n_pad)
    return tm, tk


# ----------------------------- Pallas kernels ------------------------------ #
def _gcn_pre_kernel(a_ref, xw_ref, b_ref, o_ref, *, apply_relu, tk, resident):
    """out[i] = A[i, :] @ XW + b, XW = X @ W precomputed (h <= f).

    The output block is VMEM-resident across the k axis, so it doubles as the
    f32 accumulator (no extra scratch buffer).
    """
    k = pl.program_id(1)

    @pl.when(k == 0)
    def _():
        o_ref[...] = jnp.zeros_like(o_ref)

    if resident:
        xw = xw_ref[pl.ds(pl.multiple_of(k * tk, tk), tk), :]
    else:
        xw = xw_ref[...]
    o_ref[...] += jnp.dot(a_ref[...], xw, preferred_element_type=jnp.float32)

    @pl.when(k == pl.num_programs(1) - 1)
    def _():
        out = o_ref[...] + b_ref[...]
        if apply_relu:
            out = jnp.maximum(out, 0.0)
        o_ref[...] = out


def _gcn_post_kernel(a_ref, x_ref, w_ref, b_ref, o_ref, acc_ref, *,
                     apply_relu, tk, resident):
    """out[i] = (A[i, :] @ X) @ W + b  (f < h: aggregate first, then project)."""
    k = pl.program_id(1)

    @pl.when(k == 0)
    def _():
        acc_ref[...] = jnp.zeros_like(acc_ref)

    if resident:
        xs = x_ref[pl.ds(pl.multiple_of(k * tk, tk), tk), :]
    else:
        xs = x_ref[...]
    acc_ref[...] += jnp.dot(a_ref[...], xs, preferred_element_type=jnp.float32)

    @pl.when(k == pl.num_programs(1) - 1)
    def _():
        out = jnp.dot(acc_ref[...].astype(w_ref.dtype), w_ref[...],
                      preferred_element_type=jnp.float32) + b_ref[...]
        if apply_relu:
            out = jnp.maximum(out, 0.0)
        o_ref[...] = out


# ------------------------------- layer wrapper ------------------------------ #
def gcn_layer(a_pad, x_pad, w, b, *, apply_relu, use_pallas=True,
              compute_dtype=jnp.bfloat16):
    """One GCNConv layer (relu)(A_hat @ X @ W + b) on pre-padded operands.

    a_pad : (n_pad, n_pad) compute_dtype normalized adjacency, zero-padded
            (built ONCE per graph by prepare_adjacency).
    x_pad : (n_pad, >=f) float32; columns beyond f are zero, rows beyond the
            true node count may hold garbage (neutralised by A_hat's zero
            padded columns).
    Returns (n_pad, h_pad) float32 with columns beyond h equal to zero.
    """
    n_pad = a_pad.shape[0]
    f, h = w.shape
    h_pad = _round_up(h, _LANE)
    x_width = x_pad.shape[1]
    assert x_pad.shape[0] == n_pad and x_width >= f

    b_pad = jnp.pad(b.astype(jnp.float32), (0, h_pad - h)).reshape(1, h_pad)

    if h <= f:
        # Pre-project: XW = X @ W once in XLA (tiny), kernel streams A @ XW.
        w_pad = jnp.pad(w.astype(jnp.float32),
                        ((0, x_width - f), (0, h_pad - h)))
        s_op = jnp.dot(x_pad, w_pad,
                       preferred_element_type=jnp.float32).astype(compute_dtype)
        s_width = h_pad
        post = False
        w_op = None
    else:
        # Aggregate first (A @ X), project to h at the end inside the kernel.
        f_pad = _round_up(f, _LANE)            # lane-dense X slab / accumulator
        if x_width >= f_pad:
            x_use = x_pad[:, :f_pad]
        else:
            x_use = jnp.pad(x_pad, ((0, 0), (0, f_pad - x_width)))
        s_op = x_use.astype(compute_dtype)
        w_op = jnp.pad(w, ((0, f_pad - f), (0, h_pad - h))).astype(compute_dtype)
        s_width = f_pad
        post = True

    if not use_pallas:
        # Small-graph fallback: pallas_call launch + pad/slice fixed cost
        # dwarfs the single-tile compute below ~1k nodes.
        agg = jnp.dot(a_pad, s_op, preferred_element_type=jnp.float32)
        if post:
            out = jnp.dot(agg.astype(compute_dtype), w_op,
                          preferred_element_type=jnp.float32) + b_pad
        else:
            out = agg + b_pad
        if apply_relu:
            out = jnp.maximum(out, 0.0)
        return out

    tm, tk = _choose_tiles(n_pad)
    grid = (n_pad // tm, n_pad // tk)

    # Streamed second operand (XW or X): keep it fully VMEM-resident for the
    # whole grid if it fits (DMA'd once; budget assumes x2 double-buffering),
    # otherwise stream (tk, width) slabs (re-read factor width/tm <= 25%).
    resident = 2 * n_pad * s_width * s_op.dtype.itemsize <= _RESIDENT_BUDGET_BYTES
    if resident:
        s_spec = pl.BlockSpec((n_pad, s_width), lambda i, k: (0, 0))
    else:
        s_spec = pl.BlockSpec((tk, s_width), lambda i, k: (k, 0))

    a_spec = pl.BlockSpec((tm, tk), lambda i, k: (i, k))
    b_spec = pl.BlockSpec((1, h_pad), lambda i, k: (0, 0))
    o_spec = pl.BlockSpec((tm, h_pad), lambda i, k: (i, 0))

    if post:
        kernel = functools.partial(_gcn_post_kernel, apply_relu=apply_relu,
                                   tk=tk, resident=resident)
        in_specs = [a_spec, s_spec,
                    pl.BlockSpec((s_width, h_pad), lambda i, k: (0, 0)),
                    b_spec]
        inputs = (a_pad, s_op, w_op, b_pad)
        scratch = [pltpu.VMEM((tm, s_width), jnp.float32)]
    else:
        kernel = functools.partial(_gcn_pre_kernel, apply_relu=apply_relu,
                                   tk=tk, resident=resident)
        in_specs = [a_spec, s_spec, b_spec]
        inputs = (a_pad, s_op, b_pad)
        scratch = []

    return pl.pallas_call(
        kernel,
        out_shape=jax.ShapeDtypeStruct((n_pad, h_pad), jnp.float32),
        grid_spec=pltpu.PrefetchScalarGridSpec(
            num_scalar_prefetch=0,
            grid=grid,
            in_specs=in_specs,
            out_specs=o_spec,
            scratch_shapes=scratch,
        ),
        compiler_params=pltpu.CompilerParams(
            dimension_semantics=("parallel", "arbitrary"),
            vmem_limit_bytes=_VMEM_LIMIT_BYTES,
        ),
    )(*inputs)


# ------------------------------ JAX glue ----------------------------------- #
def build_normalized_adjacency(edge_index, edge_weight, num_nodes):
    """Dense D^-1/2 (A + I) D^-1/2, matching torch_geometric gcn_norm (f32)."""
    src, dst = edge_index[0], edge_index[1]
    if edge_weight is None:
        edge_weight = jnp.ones(src.shape[0], dtype=jnp.float32)
    loop = jnp.arange(num_nodes, dtype=src.dtype)
    src = jnp.concatenate([src, loop])
    dst = jnp.concatenate([dst, loop])
    ew = jnp.concatenate([edge_weight, jnp.ones(num_nodes, dtype=jnp.float32)])
    deg = jnp.zeros(num_nodes, dtype=jnp.float32).at[dst].add(ew)
    dinv = jnp.where(deg > 0, 1.0 / jnp.sqrt(deg), 0.0)
    norm = dinv[src] * ew * dinv[dst]
    a_hat = jnp.zeros((num_nodes, num_nodes), dtype=jnp.float32)
    return a_hat.at[dst, src].add(norm)


def prepare_adjacency(a_hat, *, compute_dtype=jnp.bfloat16,
                      pad_multiple=_A_PAD_MULTIPLE):
    """Pad + cast A_hat ONCE per graph (hoisted out of the forward).

    A is the N^2-dominant HBM operand: storing it in compute_dtype halves its
    steady-state traffic and removes the per-layer pad/cast passes.
    """
    n = a_hat.shape[0]
    n_pad = _round_up(n, pad_multiple)
    return jnp.pad(a_hat, ((0, n_pad - n), (0, n_pad - n))).astype(compute_dtype)


def init_gcn_params(key, in_channels, hidden_channels, out_channels, num_layers=2):
    """Glorot-uniform weights, zero biases (as GCNConv.reset_parameters)."""
    dims = [in_channels] + [hidden_channels] * (num_layers - 1) + [out_channels]
    params = []
    for li in range(num_layers):
        key, sub = jax.random.split(key)
        fan_in, fan_out = dims[li], dims[li + 1]
        bound = jnp.sqrt(6.0 / (fan_in + fan_out))
        w = jax.random.uniform(sub, (fan_in, fan_out), jnp.float32, -bound, bound)
        b = jnp.zeros((fan_out,), jnp.float32)
        params.append((w, b))
    return params


def gcn_forward(params, node_feat, a_pad, num_nodes, *, min_pallas_nodes=1024):
    """GCN.forward (eval mode: use_bn=False, dropout = identity)."""
    n_pad = a_pad.shape[0]
    # Intermediate activations stay padded (n_pad, h_pad) f32 between layers;
    # garbage rows beyond num_nodes are neutralised by A_hat's zero columns.
    x = jnp.pad(node_feat.astype(jnp.float32),
                ((0, n_pad - num_nodes), (0, 0)))
    use_pallas = num_nodes >= min_pallas_nodes
    for li, (w, b) in enumerate(params):
        last = li == len(params) - 1
        x = gcn_layer(a_pad, x, w, b, apply_relu=not last, use_pallas=use_pallas)
        # TODO(synk): dropout(p=0.5) / BatchNorm1d omitted — eval-mode /
        # use_bn=False identities.
    out_c = params[-1][0].shape[1]
    return x[:num_nodes, :out_c]


def gcn_forward_ref(params, node_feat, a_hat):
    x = node_feat
    for li, (w, b) in enumerate(params):
        x = a_hat @ x @ w + b
        if li != len(params) - 1:
            x = jnp.maximum(x, 0.0)
    return x


# --------------------------------- main ------------------------------------ #
if __name__ == "__main__":
    N = 600           # nodes (not a tile multiple -> exercises padding)
    IN_C = 16         # in_channels
    HID = 32          # hidden_channels
    OUT_C = 8         # out_channels
    NUM_EDGES = 2048

    key = jax.random.PRNGKey(0)
    k_feat, k_edge, k_param = jax.random.split(key, 3)

    node_feat = jax.random.normal(k_feat, (N, IN_C), dtype=jnp.float32)

    # deterministic random directed edges, made symmetric (undirected graph)
    e = jax.random.randint(k_edge, (2, NUM_EDGES), 0, N, dtype=jnp.int32)
    edge_index = jnp.concatenate([e, e[::-1]], axis=1)   # (2, 2*NUM_EDGES)

    params = init_gcn_params(k_param, IN_C, HID, OUT_C, num_layers=2)

    # Hoisted per-graph preprocessing: normalize once, pad + cast to bf16 once.
    a_hat = build_normalized_adjacency(edge_index, None, N)
    a_pad = prepare_adjacency(a_hat)

    # min_pallas_nodes=0 forces the Pallas path at this small test size
    # (the default of 1024 routes tiny graphs to the XLA fallback).
    fwd = jax.jit(lambda p, x, a: gcn_forward(p, x, a, N, min_pallas_nodes=0))
    out = jax.block_until_ready(fwd(params, node_feat, a_pad))

    ref = gcn_forward_ref(params, node_feat, a_hat)
    assert out.shape == (N, OUT_C), out.shape
    max_err = float(jnp.max(jnp.abs(out - ref)))
    # bf16 operands / f32 accumulation -> loosened tolerance vs the f32 reference
    assert jnp.allclose(out, ref, atol=5e-2, rtol=5e-2), (
        "mismatch vs reference: max abs diff %.3e" % max_err)

    print("KERNEL_OK")
</pallas_src>

<mosaic_0001>
module attributes {stable_mosaic.version = 11 : i64} {
  func.func @_gcn_post_kernel(%arg0: i32, %arg1: i32, %arg2: memref<256x256xbf16, #tpu.memory_space<vmem>>, %arg3: memref<768x128xbf16, #tpu.memory_space<vmem>>, %arg4: memref<128x128xbf16, #tpu.memory_space<vmem>>, %arg5: memref<1x128xf32, #tpu.memory_space<vmem>>, %arg6: memref<256x128xf32, #tpu.memory_space<vmem>>, %arg7: memref<256x128xf32, #tpu.memory_space<vmem>>) attributes {dimension_semantics = [#tpu.dimension_semantics<parallel>, #tpu.dimension_semantics<arbitrary>], iteration_bounds = array<i64: 3, 3>, scalar_prefetch = 0 : i64, scratch_operands = 1 : i64, tpu.core_type = #tpu.core_type<tc>, window_params = [{transform_indices = @transform_0, window_bounds = array<i64: 256, 256>}, {pipeline_mode = #tpu.pipeline_mode<synchronous>, transform_indices = @transform_1, window_bounds = array<i64: 768, 128>}, {pipeline_mode = #tpu.pipeline_mode<synchronous>, transform_indices = @transform_2, window_bounds = array<i64: 128, 128>}, {pipeline_mode = #tpu.pipeline_mode<synchronous>, transform_indices = @transform_3, window_bounds = array<i64: 1, 128>}, {transform_indices = @transform_4, window_bounds = array<i64: 256, 128>}]} {
    %c0_i32 = arith.constant 0 : i32
    %0 = arith.cmpi eq, %arg1, %c0_i32 : i32
    %1 = arith.extui %0 : i1 to i32
    %c0_i32_0 = arith.constant 0 : i32
    %2 = arith.cmpi ne, %1, %c0_i32_0 : i32
    scf.if %2 {
      %cst_8 = arith.constant 0.000000e+00 : f32
      %15 = vector.broadcast %cst_8 : f32 to vector<256x128xf32>
      %c0_9 = arith.constant 0 : index
      %c0_10 = arith.constant 0 : index
      %16 = vector.load %arg7[%c0_9, %c0_10] : memref<256x128xf32, #tpu.memory_space<vmem>>, vector<256x128xf32>
      tpu.vector_store %arg7[%c0_9, %c0_10], %15 {strides = array<i32>} : memref<256x128xf32, #tpu.memory_space<vmem>>, vector<256x128xf32>,
    } else {
    }
    %c256_i32 = arith.constant 256 : i32
    %3 = arith.muli %arg1, %c256_i32 : i32
    %4 = tpu.assume_multiple %3, 256 : i32
    %5 = arith.index_cast %4 : i32 to index
    %c0 = arith.constant 0 : index
    %6 = vector.load %arg3[%5, %c0] : memref<768x128xbf16, #tpu.memory_space<vmem>>, vector<256x128xbf16>
    %c0_1 = arith.constant 0 : index
    %c0_2 = arith.constant 0 : index
    %7 = vector.load %arg7[%c0_1, %c0_2] : memref<256x128xf32, #tpu.memory_space<vmem>>, vector<256x128xf32>
    %c0_3 = arith.constant 0 : index
    %c0_4 = arith.constant 0 : index
    %8 = vector.load %arg2[%c0_3, %c0_4] : memref<256x256xbf16, #tpu.memory_space<vmem>>, vector<256x256xbf16>
    %cst = arith.constant dense<0.000000e+00> : vector<256x128xf32>
    %9 = tpu.matmul %8, %6, %cst {dimension_numbers = #tpu.dot_dimension_numbers<[1], [0], [0], [1], [0, 0, 1, 1], [], []>} : vector<256x256xbf16>, vector<256x128xbf16>, vector<256x128xf32> -> vector<256x128xf32>
    %10 = arith.addf %7, %9 : vector<256x128xf32>
    %c0_5 = arith.constant 0 : index
    %c0_6 = arith.constant 0 : index
    %11 = vector.load %arg7[%c0_5, %c0_6] : memref<256x128xf32, #tpu.memory_space<vmem>>, vector<256x128xf32>
    tpu.vector_store %arg7[%c0_5, %c0_6], %10 {strides = array<i32>} : memref<256x128xf32, #tpu.memory_space<vmem>>, vector<256x128xf32>,
    %c2_i32 = arith.constant 2 : i32
    %12 = arith.cmpi eq, %arg1, %c2_i32 : i32
    %13 = arith.extui %12 : i1 to i32
    %c0_i32_7 = arith.constant 0 : i32
    %14 = arith.cmpi ne, %13, %c0_i32_7 : i32
    scf.if %14 {
      %c0_8 = arith.constant 0 : index
      %c0_9 = arith.constant 0 : index
      %15 = vector.load %arg7[%c0_8, %c0_9] : memref<256x128xf32, #tpu.memory_space<vmem>>, vector<256x128xf32>
      %16 = arith.truncf %15 : vector<256x128xf32> to vector<256x128xbf16>
      %c0_10 = arith.constant 0 : index
      %c0_11 = arith.constant 0 : index
      %17 = vector.load %arg4[%c0_10, %c0_11] : memref<128x128xbf16, #tpu.memory_space<vmem>>, vector<128x128xbf16>
      %cst_12 = arith.constant dense<0.000000e+00> : vector<256x128xf32>
      %18 = tpu.matmul %16, %17, %cst_12 {dimension_numbers = #tpu.dot_dimension_numbers<[1], [0], [0], [1], [0, 0, 1, 1], [], []>} : vector<256x128xbf16>, vector<128x128xbf16>, vector<256x128xf32> -> vector<256x128xf32>
      %c0_13 = arith.constant 0 : index
      %c0_14 = arith.constant 0 : index
      %19 = vector.load %arg5[%c0_13, %c0_14] : memref<1x128xf32, #tpu.memory_space<vmem>>, vector<1x128xf32>
      %20 = vector.broadcast %19 : vector<1x128xf32> to vector<256x128xf32>
      %21 = arith.addf %18, %20 : vector<256x128xf32>
      %cst_15 = arith.constant 0.000000e+00 : f32
      %22 = vector.broadcast %cst_15 : f32 to vector<256x128xf32>
      %23 = arith.maximumf %21, %22 : vector<256x128xf32>
      %c0_16 = arith.constant 0 : index
      %c0_17 = arith.constant 0 : index
      %24 = vector.load %arg6[%c0_16, %c0_17] : memref<256x128xf32, #tpu.memory_space<vmem>>, vector<256x128xf32>
      tpu.vector_store %arg6[%c0_16, %c0_17], %23 {strides = array<i32>} : memref<256x128xf32, #tpu.memory_space<vmem>>, vector<256x128xf32>,
    } else {
    }
    return
  }
  func.func @transform_0(%arg0: i32, %arg1: i32) -> (i32, i32) {
    %c0_i32 = arith.constant 0 : i32
    return %arg0, %arg1 : i32, i32
  }
  func.func @transform_1(%arg0: i32, %arg1: i32) -> (i32, i32) {
    %c0_i32 = arith.constant 0 : i32
    %c0_i32_0 = arith.constant 0 : i32
    %c0_i32_1 = arith.constant 0 : i32
    return %c0_i32, %c0_i32_0 : i32, i32
  }
  func.func @transform_2(%arg0: i32, %arg1: i32) -> (i32, i32) {
    %c0_i32 = arith.constant 0 : i32
    %c0_i32_0 = arith.constant 0 : i32
    %c0_i32_1 = arith.constant 0 : i32
    return %c0_i32, %c0_i32_0 : i32, i32
  }
  func.func @transform_3(%arg0: i32, %arg1: i32) -> (i32, i32) {
    %c0_i32 = arith.constant 0 : i32
    %c0_i32_0 = arith.constant 0 : i32
    %c0_i32_1 = arith.constant 0 : i32
    return %c0_i32, %c0_i32_0 : i32, i32
  }
  func.func @transform_4(%arg0: i32, %arg1: i32) -> (i32, i32) {
    %c0_i32 = arith.constant 0 : i32
    %c0_i32_0 = arith.constant 0 : i32
    return %arg0, %c0_i32 : i32, i32
  }
}

module attributes {stable_mosaic.version = 11 : i64} {
  func.func @_gcn_pre_kernel(%arg0: i32, %arg1: i32, %arg2: memref<256x256xbf16, #tpu.memory_space<vmem>>, %arg3: memref<768x128xbf16, #tpu.memory_space<vmem>>, %arg4: memref<1x128xf32, #tpu.memory_space<vmem>>, %arg5: memref<256x128xf32, #tpu.memory_space<vmem>>) attributes {dimension_semantics = [#tpu.dimension_semantics<parallel>, #tpu.dimension_semantics<arbitrary>], iteration_bounds = array<i64: 3, 3>, scalar_prefetch = 0 : i64, scratch_operands = 0 : i64, tpu.core_type = #tpu.core_type<tc>, window_params = [{transform_indices = @transform_0, window_bounds = array<i64: 256, 256>}, {pipeline_mode = #tpu.pipeline_mode<synchronous>, transform_indices = @transform_1, window_bounds = array<i64: 768, 128>}, {pipeline_mode = #tpu.pipeline_mode<synchronous>, transform_indices = @transform_2, window_bounds = array<i64: 1, 128>}, {transform_indices = @transform_3, window_bounds = array<i64: 256, 128>}]} {
    %c0_i32 = arith.constant 0 : i32
    %0 = arith.cmpi eq, %arg1, %c0_i32 : i32
    %1 = arith.extui %0 : i1 to i32
    %c0_i32_0 = arith.constant 0 : i32
    %2 = arith.cmpi ne, %1, %c0_i32_0 : i32
    scf.if %2 {
      %cst_8 = arith.constant 0.000000e+00 : f32
      %15 = vector.broadcast %cst_8 : f32 to vector<256x128xf32>
      %c0_9 = arith.constant 0 : index
      %c0_10 = arith.constant 0 : index
      %16 = vector.load %arg5[%c0_9, %c0_10] : memref<256x128xf32, #tpu.memory_space<vmem>>, vector<256x128xf32>
      tpu.vector_store %arg5[%c0_9, %c0_10], %15 {strides = array<i32>} : memref<256x128xf32, #tpu.memory_space<vmem>>, vector<256x128xf32>,
    } else {
    }
    %c256_i32 = arith.constant 256 : i32
    %3 = arith.muli %arg1, %c256_i32 : i32
    %4 = tpu.assume_multiple %3, 256 : i32
    %5 = arith.index_cast %4 : i32 to index
    %c0 = arith.constant 0 : index
    %6 = vector.load %arg3[%5, %c0] : memref<768x128xbf16, #tpu.memory_space<vmem>>, vector<256x128xbf16>
    %c0_1 = arith.constant 0 : index
    %c0_2 = arith.constant 0 : index
    %7 = vector.load %arg5[%c0_1, %c0_2] : memref<256x128xf32, #tpu.memory_space<vmem>>, vector<256x128xf32>
    %c0_3 = arith.constant 0 : index
    %c0_4 = arith.constant 0 : index
    %8 = vector.load %arg2[%c0_3, %c0_4] : memref<256x256xbf16, #tpu.memory_space<vmem>>, vector<256x256xbf16>
    %cst = arith.constant dense<0.000000e+00> : vector<256x128xf32>
    %9 = tpu.matmul %8, %6, %cst {dimension_numbers = #tpu.dot_dimension_numbers<[1], [0], [0], [1], [0, 0, 1, 1], [], []>} : vector<256x256xbf16>, vector<256x128xbf16>, vector<256x128xf32> -> vector<256x128xf32>
    %10 = arith.addf %7, %9 : vector<256x128xf32>
    %c0_5 = arith.constant 0 : index
    %c0_6 = arith.constant 0 : index
    %11 = vector.load %arg5[%c0_5, %c0_6] : memref<256x128xf32, #tpu.memory_space<vmem>>, vector<256x128xf32>
    tpu.vector_store %arg5[%c0_5, %c0_6], %10 {strides = array<i32>} : memref<256x128xf32, #tpu.memory_space<vmem>>, vector<256x128xf32>,
    %c2_i32 = arith.constant 2 : i32
    %12 = arith.cmpi eq, %arg1, %c2_i32 : i32
    %13 = arith.extui %12 : i1 to i32
    %c0_i32_7 = arith.constant 0 : i32
    %14 = arith.cmpi ne, %13, %c0_i32_7 : i32
    scf.if %14 {
      %c0_8 = arith.constant 0 : index
      %c0_9 = arith.constant 0 : index
      %15 = vector.load %arg5[%c0_8, %c0_9] : memref<256x128xf32, #tpu.memory_space<vmem>>, vector<256x128xf32>
      %c0_10 = arith.constant 0 : index
      %c0_11 = arith.constant 0 : index
      %16 = vector.load %arg4[%c0_10, %c0_11] : memref<1x128xf32, #tpu.memory_space<vmem>>, vector<1x128xf32>
      %17 = vector.broadcast %16 : vector<1x128xf32> to vector<256x128xf32>
      %18 = arith.addf %15, %17 : vector<256x128xf32>
      %c0_12 = arith.constant 0 : index
      %c0_13 = arith.constant 0 : index
      %19 = vector.load %arg5[%c0_12, %c0_13] : memref<256x128xf32, #tpu.memory_space<vmem>>, vector<256x128xf32>
      tpu.vector_store %arg5[%c0_12, %c0_13], %18 {strides = array<i32>} : memref<256x128xf32, #tpu.memory_space<vmem>>, vector<256x128xf32>,
    } else {
    }
    return
  }
  func.func @transform_0(%arg0: i32, %arg1: i32) -> (i32, i32) {
    %c0_i32 = arith.constant 0 : i32
    return %arg0, %arg1 : i32, i32
  }
  func.func @transform_1(%arg0: i32, %arg1: i32) -> (i32, i32) {
    %c0_i32 = arith.constant 0 : i32
    %c0_i32_0 = arith.constant 0 : i32
    %c0_i32_1 = arith.constant 0 : i32
    return %c0_i32, %c0_i32_0 : i32, i32
  }
  func.func @transform_2(%arg0: i32, %arg1: i32) -> (i32, i32) {
    %c0_i32 = arith.constant 0 : i32
    %c0_i32_0 = arith.constant 0 : i32
    %c0_i32_1 = arith.constant 0 : i32
    return %c0_i32, %c0_i32_0 : i32, i32
  }
  func.func @transform_3(%arg0: i32, %arg1: i32) -> (i32, i32) {
    %c0_i32 = arith.constant 0 : i32
    %c0_i32_0 = arith.constant 0 : i32
    return %arg0, %c0_i32 : i32, i32
  }
}

</mosaic_0001>

<bundles_post_ra>
// kernel: _lambda_.2
= control target key start
LH: loop header
LB: loop body
LE: loop exit
PB: predicated region body
PF: predicated region fallthrough
CT: control target
= control target key end

     0   :  { %9 = vsyncpa [#allocation4], 0  ;;  %s2070_s0 = inlined_call_operand.hbm [shape: bf16[768,768], index: 0, kind: input, shape index: {}]   ;;  %s2071_s1 = inlined_call_operand.vmem [shape: bf16[768,128], index: 1, kind: input, shape index: {}]   ;;  %s2072_s2 = inlined_call_operand.vmem [shape: bf16[128,128], index: 2, kind: input, shape index: {}]   ;;  %s2073_s3 = inlined_call_operand.vmem [shape: f32[1,128], index: 3, kind: input, shape index: {}]   ;;  %s2074_s4 = inlined_call_operand.vmem [shape: f32[768,128], index: 4, kind: output, shape index: {}]  }
   0x1   :  { %11 = vsyncpa [#allocation4 + $0x1], 0  ;;  %s1775_s15 = smov 0   ;;  %s1777_s16 = smov 0  }
   0x2   :  { %s1779_s17 = smov 0   ;;  %s1781_s18 = smov 0  }
   0x3   :  { %s1783_s19 = smov 0   ;;  %s1785_s20 = smov 0  }
   0x4   :  { %s1787_s21 = smov 0   ;;  %s1789_s22 = smov 0  }
   0x5 LB: > { %s1232_s23 = sadd.s32 4294967295, %s1744_s22   ;;  %s26_s24 = sadd.s32 1, %s1736_s20  ;;  %s1744_s22 = sphi %s1789_s22, %s17_s22   ;;  %s1740_s21 = sphi %s1787_s21, %s2089_s21   ;;  %s1736_s20 = sphi %s1785_s20, %s2088_s20   ;;  %s1732_s19 = sphi %s1783_s19, %s2087_s19   ;;  %s1728_s18 = sphi %s1781_s18, %s2086_s18   ;;  %s1724_s17 = sphi %s1779_s17, %s2085_s17   ;;  %s1720_s16 = sphi %s1777_s16, %s2084_s16   ;;  %s1716_s15 = sphi %s1775_s15, %s2083_s15  }
   0x6   : > { %p27_p0 = scmp.ge.s32.totalorder %s26_s24, 3  ;;  %s29_s25 = sadd.s32 1, %s1740_s21 }
   0x7   : > { %s38_s26 = sadd.s32 1, %s1724_s17  ;;  %p45_p1 = scmp.ne.s32.totalorder %s1724_s17, %s1720_s16 }
   0x8   : > { %s2091_s24 = smov (%p27_p0, %s26_s24), 0  ;;  %s2093_s25 = smov (!%p27_p0, %s29_s25), %s1740_s21 }
   0x9   : > { %2077 = sst [smem:[#allocation6_spill]] %s2091_s24  ;;  %s34_s27 = ssub.s32 %s1736_s20, %s2091_s24 }
   0xa   : > { %p46_p2 = scmp.eq.s32.totalorder %s1744_s22, 0  ;;  %p31_p3 = scmp.ge.s32.totalorder %s2093_s25, 3 }
   0xb   : > { %p51_p4 = scmp.ne.s32.totalorder %s1720_s16, %s1716_s15  ;;  %p52_p6 = scmp.eq.s32.totalorder %s1232_s23, 0 }
   0xc   : > { %p1826_p5 = por %p46_p2, %p45_p1  ;;  %s2095_s25 = smov (%p31_p3, %s2093_s25), 0 }
   0xd   : > { %2079 = sst [smem:[#allocation7_spill]] %s2095_s25  ;;  %p1832_p7 = por %p52_p6, %p51_p4 }
   0xe   : > { %s33_s30 = ssub.s32 %s1740_s21, %s2095_s25  ;;  %p1578_p8 = scmp.lt.s32.totalorder %s1744_s22, 9 }
   0xf   : > { %s35_s5 = sor.u32 %s34_s27, %s33_s30  ;;  %s173_s6 = sand.u32 1, %s1724_s17  }
  0x10   : > { %p36_p9 = scmp.eq.s32.totalorder %s35_s5, 0  ;;  %s1236_s7 = sshll.u32 %s173_s6, 8 }
  0x11   : > { %s1238_s8 = sshll.u32 %s1736_s20, 1  ;;  %s1571_s10 = smul.u32 192, %s1740_s21 }
  0x12   : > { %s1842_s9 = scalar_select %p36_p9, %s1724_s17, %s38_s26  }
  0x13   : > { %s177_s11 = scalar_lea.vmem [#allocation3], %s1236_s7  ;;  %p1575_p10 = pnand %p1578_p8, %p1826_p5 }
  0x14   : > { %s188_s12 = sshll.u32 %s177_s11, 4  ;;  %s183_s13 = sadd.s32 %s1571_s10, %s1238_s8  ;;  %s189_s12 = int_to_ptr.vmem [resolvable:$true] %s188_s12 }
  0x15   : > { %s1240_s14 = sshll.u32 %s183_s13, 2  ;;  %s174_s5 = scalar_lea.sflag [#allocation4], %s173_s6 }
  0x16   : > { %s185_s27 = scalar_lea.hbm %s2070_s0, %s1240_s14  ;;  %s1746_s25 = smov 384  }
  0x17   : > { %s186_s30 = sshll.u32 %s185_s27, 4  ;;  %s1747_s26 = smov 128   ;;  %s187_s30 = int_to_ptr.hbm [resolvable:$true] %s186_s30 }
  0x18   : > { %s1748_s24 = smov 8   ;;  %p1241_p11 = scmp.ge.s32.totalorder %s1744_s22, 1 }
  0x19   : > { %1577 = dma.hbm_to_vmem [thread:$0]  (!%p1575_p10), %s187_s30, 4096, %s189_s12, %s174_s5, %s1746_s25, %s1747_s26, %s1748_s24  }
  0x1a   : > { %p196_p12 = scmp.lt.s32.totalorder %s1744_s22, 10 }
  0x1c   : > { %p197_p13 = pnand %p1241_p11, %p196_p12 }
  0x1d   : > { %s202_s28 = sand.u32 (!%p197_p13), 1, %s1720_s16  }
  0x1e   : > { %200 = sbr.rel (%p197_p13) target bundleno = 597 (0x255), region = 36  ;;  %s1242_s7 = sshll.u32 (!%p197_p13), %s202_s28, 8 }
  0x1f   : > { %s203_s8 = scalar_lea.sflag (!%p197_p13), [#allocation4], %s202_s28  ;;  %s1853_s10 = scalar_lea.vmem (!%p197_p13), [#allocation3], %s1242_s7 }
  0x23   : > { %1711 = dma.done.wait (%p1832_p7), %s203_s8, 4096  }
  0x24   : > { %1713 = vsyncadd (%p1832_p7), %s203_s8, 4294963200  ;;  %s1243_s6 = sshll.u32 %s1732_s19, 5  ;;  %p1245_p1 = scmp.ne.s32.totalorder %s1728_s18, 0 }
  0x25   : > { %p235_p0 = scmp.lt.s32.totalorder %s1243_s6, 95 }
  0x26   : > { %243 = sbr.rel (%p1245_p1) target bundleno = 76 (0x4c), region = 44 }
  0x27   : > { %s2097_s6 = smov (!%p235_p0, %s1243_s6), 95 }
  0x28   : > { %s1244_s24 = sshll.u32 %s2097_s6, 3 }
  0x29   : > { %s1863_s12 = scalar_lea.vmem %s2074_s4, %s1244_s24 }
  0x2b   : > { %v1749_v0 = vmov 0.0  }
  0x2c   : > { %244 = vst [vmem:[#allocation2 + $0xb0] sm:$0xff] %v1749_v0 }
  0x2d   : > { %245 = vst [vmem:[#allocation2] sm:$0xff] %v1749_v0 }
  0x2e   : > { %246 = vst [vmem:[#allocation2 + $0xd8] sm:$0xff] %v1749_v0 }
  0x2f   : > { %247 = vst [vmem:[#allocation2 + $0x18] sm:$0xff] %v1749_v0 }
  0x30   : > { %248 = vst [vmem:[#allocation2 + $0x50] sm:$0xff] %v1749_v0 }
  0x31   : > { %249 = vst [vmem:[#allocation2 + $0x68] sm:$0xff] %v1749_v0 }
  0x32   : > { %250 = vst [vmem:[#allocation2 + $0x30] sm:$0xff] %v1749_v0 }
  0x33   : > { %251 = vst [vmem:[#allocation2 + $0x48] sm:$0xff] %v1749_v0 }
  0x34   : > { %252 = vst [vmem:[#allocation2 + $0x80] sm:$0xff] %v1749_v0 }
  0x35   : > { %253 = vst [vmem:[#allocation2 + $0x88] sm:$0xff] %v1749_v0 }
  0x36   : > { %254 = vst [vmem:[#allocation2 + $0xe8] sm:$0xff] %v1749_v0 }
  0x37   : > { %255 = vst [vmem:[#allocation2 + $0xb8] sm:$0xff] %v1749_v0 }
  0x38   : > { %256 = vst [vmem:[#allocation2 + $0x60] sm:$0xff] %v1749_v0 }
  0x39   : > { %257 = vst [vmem:[#allocation2 + $0xf0] sm:$0xff] %v1749_v0 }
  0x3a   : > { %258 = vst [vmem:[#allocation2 + $0x8] sm:$0xff] %v1749_v0 }
  0x3b   : > { %259 = vst [vmem:[#allocation2 + $0x78] sm:$0xff] %v1749_v0 }
  0x3c   : > { %260 = vst [vmem:[#allocation2 + $0x38] sm:$0xff] %v1749_v0 }
  0x3d   : > { %261 = vst [vmem:[#allocation2 + $0x58] sm:$0xff] %v1749_v0 }
  0x3e   : > { %262 = vst [vmem:[#allocation2 + $0x40] sm:$0xff] %v1749_v0 }
  0x3f   : > { %263 = vst [vmem:[#allocation2 + $0xc8] sm:$0xff] %v1749_v0 }
  0x40   : > { %264 = vst [vmem:[#allocation2 + $0xe0] sm:$0xff] %v1749_v0 }
  0x41   : > { %265 = vst [vmem:[#allocation2 + $0x90] sm:$0xff] %v1749_v0 }
  0x42   : > { %266 = vst [vmem:[#allocation2 + $0x70] sm:$0xff] %v1749_v0 }
  0x43   : > { %267 = vst [vmem:[#allocation2 + $0xc0] sm:$0xff] %v1749_v0 }
  0x44   : > { %268 = vst [vmem:[#allocation2 + $0xa8] sm:$0xff] %v1749_v0 }
  0x45   : > { %269 = vst [vmem:[#allocation2 + $0xd0] sm:$0xff] %v1749_v0 }
  0x46   : > { %270 = vst [vmem:[#allocation2 + $0x10] sm:$0xff] %v1749_v0 }
  0x47   : > { %271 = vst [vmem:[#allocation2 + $0x28] sm:$0xff] %v1749_v0 }
  0x48   : > { %272 = vst [vmem:[#allocation2 + $0xa0] sm:$0xff] %v1749_v0 }
  0x49   : > { %273 = vst [vmem:[#allocation2 + $0xf8] sm:$0xff] %v1749_v0 }
  0x4a   : > { %274 = vst [vmem:[#allocation2 + $0x20] sm:$0xff] %v1749_v0 }
  0x4b   : > { %275 = vst [vmem:[#allocation2 + $0x98] sm:$0xff] %v1749_v0 }
  0x4c PF: > { %s1246_s19 = sshll.u32 %s1728_s18, 8  ;;  %v1250_v15 = vld [vmem:[%s1853_s10] sm:$0xf]  ;;  %v1492_v17 = vld [vmem:[%s1853_s10 + $0x4] sm:$0xf0]  ;;  %p1440_p2 = scmp.ne.s32.totalorder %s1728_s18, 2 }
  0x4d   : > { %s277_s29 = sshra.s32 %s1246_s19, 3  ;;  %v1314_v18 = vld [vmem:[%s1853_s10 + $0x80] sm:$0xf]  ;;  %v1508_v20 = vld [vmem:[%s1853_s10 + $0x84] sm:$0xf0]  ;;  %v1251_v25 = vor.u32 %v1492_v17, %v1250_v15 }
  0x4e   : > { %s1247_s13 = sshll.u32 %s277_s29, 2  ;;  %v1491_v21 = vld [vmem:[%s1853_s10 + $0x4] sm:$0xf]  ;;  %v1252_v22 = vld [vmem:[%s1853_s10 + $0x8] sm:$0xf0]  ;;  %v1315_v26 = vor.u32 %v1508_v20, %v1314_v18 }
  0x4f   : > { %s1870_s23 = scalar_lea.vmem %s2071_s1, %s1247_s13  ;;  %v1507_v23 = vld [vmem:[%s1853_s10 + $0x84] sm:$0xf]  ;;  %v1316_v24 = vld [vmem:[%s1853_s10 + $0x88] sm:$0xf0]  ;;  %v1255_v27 = vor.u32 %v1491_v21, %v1252_v22  ;;  %v1258_v29 = vld [vmem:[%s1853_s10 + $0x10] sm:$0xf] }
  0x50   : > { %v1482_v1 = vld [vmem:[%s1870_s23 + $0x38] sm:$0xff]  ;;  %v1481_v3 = vld [vmem:[%s1870_s23 + $0x30] sm:$0xff]  ;;  %v1480_v5 = vld [vmem:[%s1870_s23 + $0x28] sm:$0xff]  ;;  %v1319_v28 = vor.u32 %v1507_v23, %v1316_v24 }
  0x51   : > { %v1490_v2 = vld [vmem:[%s1870_s23 + $0x78] sm:$0xff]  ;;  %633 = vmatpush.bf16.msra.mxu0 %v1482_v1  ;;  %1531 = vmatpush.bf16.msra.mxu2 %v1482_v1  ;;  %v1489_v4 = vld [vmem:[%s1870_s23 + $0x70] sm:$0xff]  ;;  %v1488_v6 = vld [vmem:[%s1870_s23 + $0x68] sm:$0xff] }
  0x52   : > { %722 = vmatpush.bf16.msra.mxu1 %v1490_v2  ;;  %1539 = vmatpush.bf16.msra.mxu3 %v1490_v2  ;;  %v1479_v7 = vld [vmem:[%s1870_s23 + $0x20] sm:$0xff]  ;;  %v1478_v9 = vld [vmem:[%s1870_s23 + $0x18] sm:$0xff]  ;;  %v1477_v11 = vld [vmem:[%s1870_s23 + $0x10] sm:$0xff] }
  0x53   : > { %v1487_v8 = vld [vmem:[%s1870_s23 + $0x60] sm:$0xff]  ;;  %v1486_v10 = vld [vmem:[%s1870_s23 + $0x58] sm:$0xff]  ;;  %v1485_v12 = vld [vmem:[%s1870_s23 + $0x50] sm:$0xff] }
  0x54   : > { %v1476_v13 = vld [vmem:[%s1870_s23 + $0x8] sm:$0xff]  ;;  %v1475_v16 = vld [vmem:[%s1870_s23] sm:$0xff]  ;;  %v1494_v30 = vld [vmem:[%s1853_s10 + $0x14] sm:$0xf0] }
  0x55   : > { %634 = vmatpush.bf16.msra.mxu0 %v1481_v3  ;;  %1532 = vmatpush.bf16.msra.mxu2 %v1481_v3  ;;  %v1484_v14 = vld [vmem:[%s1870_s23 + $0x48] sm:$0xff]  ;;  %v1483_v19 = vld [vmem:[%s1870_s23 + $0x40] sm:$0xff]  ;;  %v1322_v31 = vld [vmem:[%s1853_s10 + $0x90] sm:$0xf]  ;;  %v1259_v37 = vor.u32 %v1494_v30, %v1258_v29 }
  0x56   : > { %723 = vmatpush.bf16.msra.mxu1 %v1489_v4  ;;  %1540 = vmatpush.bf16.msra.mxu3 %v1489_v4  ;;  %v1510_v32 = vld [vmem:[%s1853_s10 + $0x94] sm:$0xf0]  ;;  %v1493_v33 = vld [vmem:[%s1853_s10 + $0x14] sm:$0xf]  ;;  %v1260_v34 = vld [vmem:[%s1853_s10 + $0x18] sm:$0xf0] }
  0x57   : > { %v1509_v35 = vld [vmem:[%s1853_s10 + $0x94] sm:$0xf]  ;;  %v1324_v36 = vld [vmem:[%s1853_s10 + $0x98] sm:$0xf0]  ;;  %v1323_v38 = vor.u32 %v1510_v32, %v1322_v31  ;;  %v1263_v39 = vor.u32 %v1493_v33, %v1260_v34  ;;  %v1266_v41 = vld [vmem:[%s1853_s10 + $0x20] sm:$0xf] }
  0x58   : > { %v1327_v40 = vor.u32 %v1509_v35, %v1324_v36  ;;  %v1496_v42 = vld [vmem:[%s1853_s10 + $0x24] sm:$0xf0]  ;;  %v1330_v43 = vld [vmem:[%s1853_s10 + $0xa0] sm:$0xf]  ;;  %v1495_v45 = vld [vmem:[%s1853_s10 + $0x24] sm:$0xf] }
  0x59   : > { %635 = vmatpush.bf16.msra.mxu0 %v1480_v5  ;;  %1533 = vmatpush.bf16.msra.mxu2 %v1480_v5  ;;  %v1512_v44 = vld [vmem:[%s1853_s10 + $0xa4] sm:$0xf0]  ;;  %v1268_v46 = vld [vmem:[%s1853_s10 + $0x28] sm:$0xf0]  ;;  %v1511_v47 = vld [vmem:[%s1853_s10 + $0xa4] sm:$0xf]  ;;  %v1267_v49 = vor.u32 %v1496_v42, %v1266_v41 }
  0x5a   : > { %724 = vmatpush.bf16.msra.mxu1 %v1488_v6  ;;  %1541 = vmatpush.bf16.msra.mxu3 %v1488_v6  ;;  %v1332_v48 = vld [vmem:[%s1853_s10 + $0xa8] sm:$0xf0]  ;;  %v1331_v50 = vor.u32 %v1512_v44, %v1330_v43  ;;  %v1271_v51 = vor.u32 %v1495_v45, %v1268_v46  ;;  %v1274_v53 = vld [vmem:[%s1853_s10 + $0x30] sm:$0xf]  ;;  %v1498_v54 = vld [vmem:[%s1853_s10 + $0x34] sm:$0xf0] }
  0x5b   : > { %v1335_v52 = vor.u32 %v1511_v47, %v1332_v48  ;;  %v1338_v55 = vld [vmem:[%s1853_s10 + $0xb0] sm:$0xf]  ;;  %v1514_v56 = vld [vmem:[%s1853_s10 + $0xb4] sm:$0xf0]  ;;  %v1497_v57 = vld [vmem:[%s1853_s10 + $0x34] sm:$0xf]  ;;  %v1275_v61 = vor.u32 %v1498_v54, %v1274_v53 }
  0x5c   : > { %v1276_v58 = vld [vmem:[%s1853_s10 + $0x38] sm:$0xf0]  ;;  %v1513_v59 = vld [vmem:[%s1853_s10 + $0xb4] sm:$0xf]  ;;  %v1339_v62 = vor.u32 %v1514_v56, %v1338_v55  ;;  %v1282_v1 = vld [vmem:[%s1853_s10 + $0x40] sm:$0xf] }
  0x5d   : > { %636 = vmatpush.bf16.msra.mxu0 %v1479_v7  ;;  %1534 = vmatpush.bf16.msra.mxu2 %v1479_v7  ;;  %v1340_v60 = vld [vmem:[%s1853_s10 + $0xb8] sm:$0xf0]  ;;  %v1279_v63 = vor.u32 %v1497_v57, %v1276_v58  ;;  %v1500_v2 = vld [vmem:[%s1853_s10 + $0x44] sm:$0xf0]  ;;  %v1346_v3 = vld [vmem:[%s1853_s10 + $0xc0] sm:$0xf] }
  0x5e   : > { %725 = vmatpush.bf16.msra.mxu1 %v1487_v8  ;;  %1542 = vmatpush.bf16.msra.mxu3 %v1487_v8  ;;  %v1343_v0 = vor.u32 %v1513_v59, %v1340_v60  ;;  %v1516_v4 = vld [vmem:[%s1853_s10 + $0xc4] sm:$0xf0]  ;;  %v1499_v5 = vld [vmem:[%s1853_s10 + $0x44] sm:$0xf]  ;;  %v1284_v6 = vld [vmem:[%s1853_s10 + $0x48] sm:$0xf0] }
  0x5f   : > { %v1515_v7 = vld [vmem:[%s1853_s10 + $0xc4] sm:$0xf]  ;;  %v1348_v8 = vld [vmem:[%s1853_s10 + $0xc8] sm:$0xf0]  ;;  %v1354_v15 = vld [vmem:[%s1853_s10 + $0xd0] sm:$0xf] }
  0x60   : > { %v1501_v17 = vld [vmem:[%s1853_s10 + $0x54] sm:$0xf]  ;;  %v1292_v18 = vld [vmem:[%s1853_s10 + $0x58] sm:$0xf0]  ;;  %v1503_v29 = vld [vmem:[%s1853_s10 + $0x64] sm:$0xf] }
  0x61   : > { %637 = vmatpush.bf16.msra.mxu0 %v1478_v9  ;;  %1535 = vmatpush.bf16.msra.mxu2 %v1478_v9  ;;  %v1283_v9 = vor.u32 %v1500_v2, %v1282_v1  ;;  %v1356_v20 = vld [vmem:[%s1853_s10 + $0xd8] sm:$0xf0]  ;;  %v1295_v23 = vor.u32 %v1501_v17, %v1292_v18  ;;  %v1300_v30 = vld [vmem:[%s1853_s10 + $0x68] sm:$0xf0]  ;;  %v1519_v31 = vld [vmem:[%s1853_s10 + $0xe4] sm:$0xf] }
  0x62   : > { %726 = vmatpush.bf16.msra.mxu1 %v1486_v10  ;;  %1543 = vmatpush.bf16.msra.mxu3 %v1486_v10  ;;  %v1347_v10 = vor.u32 %v1516_v4, %v1346_v3  ;;  %v1364_v32 = vld [vmem:[%s1853_s10 + $0xe8] sm:$0xf0]  ;;  %v1303_v35 = vor.u32 %v1503_v29, %v1300_v30  ;;  %v1505_v41 = vld [vmem:[%s1853_s10 + $0x74] sm:$0xf]  ;;  %v1308_v42 = vld [vmem:[%s1853_s10 + $0x78] sm:$0xf0] }
  0x63   : > { %v1367_v36 = vor.u32 %v1519_v31, %v1364_v32  ;;  %v1521_v43 = vld [vmem:[%s1853_s10 + $0xf4] sm:$0xf]  ;;  %v1372_v44 = vld [vmem:[%s1853_s10 + $0xf8] sm:$0xf0]  ;;  %v1311_v47 = vor.u32 %v1505_v41, %v1308_v42  ;;  %v314_v59 = vld [vmem:[#allocation2] sm:$0xff] }
  0x64   : > { %v1375_v48 = vor.u32 %v1521_v43, %v1372_v44  ;;  %v329_v55 = vld [vmem:[#allocation2 + $0x38] sm:$0xff]  ;;  %v333_v31 = vld [vmem:[#allocation2 + $0xe0] sm:$0xff]  ;;  %v334_v41 = vld [vmem:[#allocation2 + $0x90] sm:$0xff] }
  0x65   : > { %638 = vmatpush.bf16.msra.mxu0 %v1477_v11  ;;  %1536 = vmatpush.bf16.msra.mxu2 %v1477_v11  ;;  %v1287_v11 = vor.u32 %v1499_v5, %v1284_v6  ;;  %v330_v1 = vld [vmem:[#allocation2 + $0x58] sm:$0xff] }
  0x66   : > { %727 = vmatpush.bf16.msra.mxu1 %v1485_v12  ;;  %1544 = vmatpush.bf16.msra.mxu3 %v1485_v12  ;;  %v1351_v12 = vor.u32 %v1515_v7, %v1348_v8  ;;  %v315_v5 = vld [vmem:[#allocation2 + $0xd8] sm:$0xff] }
  0x69   : > { %639 = vmatpush.bf16.msra.mxu0 %v1476_v13  ;;  %1537 = vmatpush.bf16.msra.mxu2 %v1476_v13  ;;  %v1290_v13 = vld [vmem:[%s1853_s10 + $0x50] sm:$0xf] }
  0x6a   : > { %728 = vmatpush.bf16.msra.mxu1 %v1484_v14  ;;  %1545 = vmatpush.bf16.msra.mxu3 %v1484_v14  ;;  %v1502_v14 = vld [vmem:[%s1853_s10 + $0x54] sm:$0xf0] }
  0x6b   : > { %v1291_v21 = vor.u32 %v1502_v14, %v1290_v13 }
  0x6d   : > { %640 = vmatpush.bf16.msra.mxu0 %v1475_v16  ;;  %1538 = vmatpush.bf16.msra.mxu2 %v1475_v16  ;;  %v1518_v16 = vld [vmem:[%s1853_s10 + $0xd4] sm:$0xf0] }
  0x6e   : > { %729 = vmatpush.bf16.msra.mxu1 %v1483_v19  ;;  %1546 = vmatpush.bf16.msra.mxu3 %v1483_v19  ;;  %v1517_v19 = vld [vmem:[%s1853_s10 + $0xd4] sm:$0xf]  ;;  %v1355_v22 = vor.u32 %v1518_v16, %v1354_v15  ;;  %v316_v15 = vld [vmem:[#allocation2 + $0x18] sm:$0xff] }
  0x6f   : > { %v1359_v24 = vor.u32 %v1517_v19, %v1356_v20 }
  0x70   : > { %641 = vmatmul.bf16.vlgmr.msra.gmra.mxu0 %v1251_v25  ;;  %681 = vmatmul.bf16.vlgmr.msra.gmra.mxu2 %v1315_v26  ;;  %v1298_v25 = vld [vmem:[%s1853_s10 + $0x60] sm:$0xf]  ;;  %v1504_v26 = vld [vmem:[%s1853_s10 + $0x64] sm:$0xf0] }
  0x71   : > { %730 = vmatmul.bf16.vlgmr.msra.gmra.mxu1 %v1255_v27  ;;  %770 = vmatmul.bf16.vlgmr.msra.gmra.mxu3 %v1319_v28  ;;  %v1362_v27 = vld [vmem:[%s1853_s10 + $0xe0] sm:$0xf]  ;;  %v1520_v28 = vld [vmem:[%s1853_s10 + $0xe4] sm:$0xf0]  ;;  %v1299_v33 = vor.u32 %v1504_v26, %v1298_v25  ;;  %v317_v25 = vld [vmem:[#allocation2 + $0x50] sm:$0xff] }
  0x72   : > { %v1363_v34 = vor.u32 %v1520_v28, %v1362_v27 }
  0x80   : > { %646 = vmatmul.bf16.gmra.mxu0 %v1259_v37  ;;  %686 = vmatmul.bf16.gmra.mxu2 %v1323_v38  ;;  %v1306_v37 = vld [vmem:[%s1853_s10 + $0x70] sm:$0xf]  ;;  %v1506_v38 = vld [vmem:[%s1853_s10 + $0x74] sm:$0xf0] }
  0x81   : > { %735 = vmatmul.bf16.gmra.mxu1 %v1263_v39  ;;  %775 = vmatmul.bf16.gmra.mxu3 %v1327_v40  ;;  %v1370_v39 = vld [vmem:[%s1853_s10 + $0xf0] sm:$0xf]  ;;  %v1522_v40 = vld [vmem:[%s1853_s10 + $0xf4] sm:$0xf0]  ;;  %v1307_v45 = vor.u32 %v1506_v38, %v1306_v37 }
  0x82   : > { %v1371_v46 = vor.u32 %v1522_v40, %v1370_v39 }
  0x90   : > { %651 = vmatmul.bf16.gmra.mxu0 %v1267_v49  ;;  %691 = vmatmul.bf16.gmra.mxu2 %v1331_v50  ;;  %v313_v50 = vld [vmem:[#allocation2 + $0xb0] sm:$0xff] }
  0x91   : > { %740 = vmatmul.bf16.gmra.mxu1 %v1271_v51  ;;  %780 = vmatmul.bf16.gmra.mxu3 %v1335_v52 }
  0xa0   : > { %656 = vmatmul.bf16.gmra.mxu0 %v1275_v61  ;;  %696 = vmatmul.bf16.gmra.mxu2 %v1339_v62 }
  0xa1   : > { %745 = vmatmul.bf16.gmra.mxu1 %v1279_v63  ;;  %785 = vmatmul.bf16.gmra.mxu3 %v1343_v0 }
  0xb0   : > { %661 = vmatmul.bf16.gmra.mxu0 %v1283_v9  ;;  %701 = vmatmul.bf16.gmra.mxu2 %v1347_v10 }
  0xb1   : > { %750 = vmatmul.bf16.gmra.mxu1 %v1287_v11  ;;  %790 = vmatmul.bf16.gmra.mxu3 %v1351_v12  ;;  %v331_v11 = vld [vmem:[#allocation2 + $0x40] sm:$0xff] }
  0xc0   : > { %666 = vmatmul.bf16.gmra.mxu0 %v1291_v21  ;;  %706 = vmatmul.bf16.gmra.mxu2 %v1355_v22  ;;  %v332_v21 = vld [vmem:[#allocation2 + $0xc8] sm:$0xff] }
  0xc1   : > { %755 = vmatmul.bf16.gmra.mxu1 %v1295_v23  ;;  %795 = vmatmul.bf16.gmra.mxu3 %v1359_v24 }
  0xd0   : > { %671 = vmatmul.bf16.gmra.mxu0 %v1299_v33  ;;  %711 = vmatmul.bf16.gmra.mxu2 %v1363_v34 }
  0xd1   : > { %760 = vmatmul.bf16.gmra.mxu1 %v1303_v35  ;;  %800 = vmatmul.bf16.gmra.mxu3 %v1367_v36  ;;  %v318_v35 = vld [vmem:[#allocation2 + $0x68] sm:$0xff] }
  0xe0   : > { %676 = vmatmul.bf16.gmra.mxu0 %v1307_v45  ;;  %716 = vmatmul.bf16.gmra.mxu2 %v1371_v46  ;;  %v319_v45 = vld [vmem:[#allocation2 + $0x30] sm:$0xff] }
  0xe1   : > { %765 = vmatmul.bf16.gmra.mxu1 %v1311_v47  ;;  %805 = vmatmul.bf16.gmra.mxu3 %v1375_v48 }
  0xed   : > { %v642_v49 = vpop.f32.mrf.mxu0 }
  0xee   : > { %v731_v51 = vpop.f32.mrf.mxu1 }
  0xef   : > { %v732_v52 = vadd.f32 %v731_v51, %v642_v49  ;;  %v335_v51 = vld [vmem:[#allocation2 + $0x70] sm:$0xff] }
  0xf1   : > { %v811_v53 = vadd.f32 %v732_v52, %v313_v50 }
  0xf3   : > { %843 = vst [vmem:[#allocation2 + $0xb0] sm:$0xff] %v811_v53  ;;  %v682_v54 = vpop.f32.mrf.mxu2 }
  0xf4   : > { %v771_v56 = vpop.f32.mrf.mxu3 }
  0xf5   : > { %v772_v57 = vadd.f32 %v771_v56, %v682_v54  ;;  %v644_v58 = vpop.f32.mrf.mxu0 }
  0xf6   : > { %v733_v60 = vpop.f32.mrf.mxu1 }
  0xf7   : > { %v827_v61 = vadd.f32 %v772_v57, %v329_v55  ;;  %v734_v62 = vadd.f32 %v733_v60, %v644_v58  ;;  %v320_v55 = vld [vmem:[#allocation2 + $0x48] sm:$0xff] }
  0xf9   : > { %859 = vst [vmem:[#allocation2 + $0x38] sm:$0xff] %v827_v61  ;;  %v812_v63 = vadd.f32 %v734_v62, %v314_v59  ;;  %v336_v61 = vld [vmem:[#allocation2 + $0xc0] sm:$0xff] }
  0xfb   : > { %844 = vst [vmem:[#allocation2] sm:$0xff] %v812_v63  ;;  %v684_v0 = vpop.f32.mrf.mxu2 }
  0xfc   : > { %v773_v2 = vpop.f32.mrf.mxu3 }
  0xfd   : > { %v774_v3 = vadd.f32 %v773_v2, %v684_v0  ;;  %v647_v4 = vpop.f32.mrf.mxu0 }
  0xfe   : > { %v736_v6 = vpop.f32.mrf.mxu1 }
  0xff   : > { %v828_v7 = vadd.f32 %v774_v3, %v330_v1  ;;  %v737_v8 = vadd.f32 %v736_v6, %v647_v4  ;;  %v321_v1 = vld [vmem:[#allocation2 + $0x80] sm:$0xff] }
 0x101   : > { %860 = vst [vmem:[#allocation2 + $0x58] sm:$0xff] %v828_v7  ;;  %v813_v9 = vadd.f32 %v737_v8, %v315_v5  ;;  %v337_v7 = vld [vmem:[#allocation2 + $0xa8] sm:$0xff] }
 0x103   : > { %845 = vst [vmem:[#allocation2 + $0xd8] sm:$0xff] %v813_v9  ;;  %v687_v10 = vpop.f32.mrf.mxu2 }
 0x104   : > { %v776_v12 = vpop.f32.mrf.mxu3 }
 0x105   : > { %v777_v13 = vadd.f32 %v776_v12, %v687_v10  ;;  %v649_v14 = vpop.f32.mrf.mxu0 }
 0x106   : > { %v738_v16 = vpop.f32.mrf.mxu1 }
 0x107   : > { %v829_v17 = vadd.f32 %v777_v13, %v331_v11  ;;  %v739_v18 = vadd.f32 %v738_v16, %v649_v14  ;;  %v322_v11 = vld [vmem:[#allocation2 + $0x88] sm:$0xff] }
 0x109   : > { %861 = vst [vmem:[#allocation2 + $0x40] sm:$0xff] %v829_v17  ;;  %v814_v19 = vadd.f32 %v739_v18, %v316_v15  ;;  %v338_v17 = vld [vmem:[#allocation2 + $0xd0] sm:$0xff] }
 0x10b   : > { %846 = vst [vmem:[#allocation2 + $0x18] sm:$0xff] %v814_v19  ;;  %v689_v20 = vpop.f32.mrf.mxu2 }
 0x10c   : > { %v778_v22 = vpop.f32.mrf.mxu3 }
 0x10d   : > { %v779_v23 = vadd.f32 %v778_v22, %v689_v20  ;;  %v652_v24 = vpop.f32.mrf.mxu0 }
 0x10e   : > { %v741_v26 = vpop.f32.mrf.mxu1 }
 0x10f   : > { %v830_v27 = vadd.f32 %v779_v23, %v332_v21  ;;  %v742_v28 = vadd.f32 %v741_v26, %v652_v24  ;;  %v323_v21 = vld [vmem:[#allocation2 + $0xe8] sm:$0xff] }
 0x111   : > { %862 = vst [vmem:[#allocation2 + $0xc8] sm:$0xff] %v830_v27  ;;  %v815_v29 = vadd.f32 %v742_v28, %v317_v25  ;;  %v339_v27 = vld [vmem:[#allocation2 + $0x10] sm:$0xff] }
 0x113   : > { %847 = vst [vmem:[#allocation2 + $0x50] sm:$0xff] %v815_v29  ;;  %v692_v30 = vpop.f32.mrf.mxu2 }
 0x114   : > { %v781_v32 = vpop.f32.mrf.mxu3 }
 0x115   : > { %v782_v33 = vadd.f32 %v781_v32, %v692_v30  ;;  %v654_v34 = vpop.f32.mrf.mxu0 }
 0x116   : > { %v743_v36 = vpop.f32.mrf.mxu1 }
 0x117   : > { %v831_v37 = vadd.f32 %v782_v33, %v333_v31  ;;  %v744_v38 = vadd.f32 %v743_v36, %v654_v34  ;;  %v324_v31 = vld [vmem:[#allocation2 + $0xb8] sm:$0xff] }
 0x119   : > { %863 = vst [vmem:[#allocation2 + $0xe0] sm:$0xff] %v831_v37  ;;  %v816_v39 = vadd.f32 %v744_v38, %v318_v35  ;;  %v340_v37 = vld [vmem:[#allocation2 + $0x28] sm:$0xff] }
 0x11b   : > { %848 = vst [vmem:[#allocation2 + $0x68] sm:$0xff] %v816_v39  ;;  %v694_v40 = vpop.f32.mrf.mxu2 }
 0x11c   : > { %v783_v42 = vpop.f32.mrf.mxu3 }
 0x11d   : > { %v784_v43 = vadd.f32 %v783_v42, %v694_v40  ;;  %v657_v44 = vpop.f32.mrf.mxu0 }
 0x11e   : > { %v746_v46 = vpop.f32.mrf.mxu1 }
 0x11f   : > { %v832_v47 = vadd.f32 %v784_v43, %v334_v41  ;;  %v747_v48 = vadd.f32 %v746_v46, %v657_v44  ;;  %v325_v41 = vld [vmem:[#allocation2 + $0x60] sm:$0xff] }
 0x121   : > { %864 = vst [vmem:[#allocation2 + $0x90] sm:$0xff] %v832_v47  ;;  %v817_v49 = vadd.f32 %v747_v48, %v319_v45  ;;  %v341_v47 = vld [vmem:[#allocation2 + $0xa0] sm:$0xff] }
 0x123   : > { %849 = vst [vmem:[#allocation2 + $0x30] sm:$0xff] %v817_v49  ;;  %v697_v50 = vpop.f32.mrf.mxu2 }
 0x124   : > { %v786_v52 = vpop.f32.mrf.mxu3 }
 0x125   : > { %v787_v53 = vadd.f32 %v786_v52, %v697_v50  ;;  %v659_v54 = vpop.f32.mrf.mxu0 }
 0x126   : > { %v748_v56 = vpop.f32.mrf.mxu1 }
 0x127   : > { %v833_v57 = vadd.f32 %v787_v53, %v335_v51  ;;  %v749_v58 = vadd.f32 %v748_v56, %v659_v54  ;;  %v326_v51 = vld [vmem:[#allocation2 + $0xf0] sm:$0xff] }
 0x129   : > { %865 = vst [vmem:[#allocation2 + $0x70] sm:$0xff] %v833_v57  ;;  %v818_v59 = vadd.f32 %v749_v58, %v320_v55  ;;  %v342_v57 = vld [vmem:[#allocation2 + $0xf8] sm:$0xff] }
 0x12b   : > { %850 = vst [vmem:[#allocation2 + $0x48] sm:$0xff] %v818_v59  ;;  %v699_v60 = vpop.f32.mrf.mxu2 }
 0x12c   : > { %v788_v62 = vpop.f32.mrf.mxu3 }
 0x12d   : > { %v789_v63 = vadd.f32 %v788_v62, %v699_v60  ;;  %v662_v0 = vpop.f32.mrf.mxu0 }
 0x12e   : > { %v751_v2 = vpop.f32.mrf.mxu1 }
 0x12f   : > { %v834_v3 = vadd.f32 %v789_v63, %v336_v61  ;;  %v752_v4 = vadd.f32 %v751_v2, %v662_v0  ;;  %v327_v61 = vld [vmem:[#allocation2 + $0x8] sm:$0xff] }
 0x131   : > { %866 = vst [vmem:[#allocation2 + $0xc0] sm:$0xff] %v834_v3  ;;  %v819_v5 = vadd.f32 %v752_v4, %v321_v1  ;;  %v343_v3 = vld [vmem:[#allocation2 + $0x20] sm:$0xff] }
 0x133   : > { %851 = vst [vmem:[#allocation2 + $0x80] sm:$0xff] %v819_v5  ;;  %v702_v6 = vpop.f32.mrf.mxu2 }
 0x134   : > { %v791_v8 = vpop.f32.mrf.mxu3 }
 0x135   : > { %v792_v9 = vadd.f32 %v791_v8, %v702_v6  ;;  %v664_v10 = vpop.f32.mrf.mxu0 }
 0x136   : > { %v753_v12 = vpop.f32.mrf.mxu1 }
 0x137   : > { %v835_v13 = vadd.f32 %v792_v9, %v337_v7  ;;  %v754_v14 = vadd.f32 %v753_v12, %v664_v10  ;;  %v328_v7 = vld [vmem:[#allocation2 + $0x78] sm:$0xff] }
 0x139   : > { %867 = vst [vmem:[#allocation2 + $0xa8] sm:$0xff] %v835_v13  ;;  %v820_v15 = vadd.f32 %v754_v14, %v322_v11  ;;  %v344_v13 = vld [vmem:[#allocation2 + $0x98] sm:$0xff] }
 0x13b   : > { %852 = vst [vmem:[#allocation2 + $0x88] sm:$0xff] %v820_v15  ;;  %v704_v16 = vpop.f32.mrf.mxu2 }
 0x13c   : > { %v793_v18 = vpop.f32.mrf.mxu3 }
 0x13d   : > { %v794_v19 = vadd.f32 %v793_v18, %v704_v16  ;;  %v667_v20 = vpop.f32.mrf.mxu0 }
 0x13e   : > { %v756_v22 = vpop.f32.mrf.mxu1 }
 0x13f   : > { %v836_v23 = vadd.f32 %v794_v19, %v338_v17  ;;  %v757_v24 = vadd.f32 %v756_v22, %v667_v20 }
 0x141   : > { %868 = vst [vmem:[#allocation2 + $0xd0] sm:$0xff] %v836_v23  ;;  %v821_v25 = vadd.f32 %v757_v24, %v323_v21 }
 0x143   : > { %853 = vst [vmem:[#allocation2 + $0xe8] sm:$0xff] %v821_v25  ;;  %v707_v26 = vpop.f32.mrf.mxu2 }
 0x144   : > { %v796_v28 = vpop.f32.mrf.mxu3 }
 0x145   : > { %v797_v29 = vadd.f32 %v796_v28, %v707_v26  ;;  %v669_v30 = vpop.f32.mrf.mxu0 }
 0x146   : > { %v758_v32 = vpop.f32.mrf.mxu1 }
 0x147   : > { %v837_v33 = vadd.f32 %v797_v29, %v339_v27  ;;  %v759_v34 = vadd.f32 %v758_v32, %v669_v30 }
 0x149   : > { %869 = vst [vmem:[#allocation2 + $0x10] sm:$0xff] %v837_v33  ;;  %v822_v35 = vadd.f32 %v759_v34, %v324_v31 }
 0x14b   : > { %854 = vst [vmem:[#allocation2 + $0xb8] sm:$0xff] %v822_v35  ;;  %v709_v36 = vpop.f32.mrf.mxu2 }
 0x14c   : > { %v798_v38 = vpop.f32.mrf.mxu3 }
 0x14d   : > { %v799_v39 = vadd.f32 %v798_v38, %v709_v36  ;;  %v672_v40 = vpop.f32.mrf.mxu0 }
 0x14e   : > { %v761_v42 = vpop.f32.mrf.mxu1 }
 0x14f   : > { %v838_v43 = vadd.f32 %v799_v39, %v340_v37  ;;  %v762_v44 = vadd.f32 %v761_v42, %v672_v40 }
 0x151   : > { %870 = vst [vmem:[#allocation2 + $0x28] sm:$0xff] %v838_v43  ;;  %v823_v45 = vadd.f32 %v762_v44, %v325_v41 }
 0x153   : > { %855 = vst [vmem:[#allocation2 + $0x60] sm:$0xff] %v823_v45  ;;  %v712_v46 = vpop.f32.mrf.mxu2 }
 0x154   : > { %v801_v48 = vpop.f32.mrf.mxu3 }
 0x155   : > { %v802_v49 = vadd.f32 %v801_v48, %v712_v46  ;;  %v674_v50 = vpop.f32.mrf.mxu0 }
 0x156   : > { %v763_v52 = vpop.f32.mrf.mxu1 }
 0x157   : > { %v839_v53 = vadd.f32 %v802_v49, %v341_v47  ;;  %v764_v54 = vadd.f32 %v763_v52, %v674_v50 }
 0x159   : > { %871 = vst [vmem:[#allocation2 + $0xa0] sm:$0xff] %v839_v53  ;;  %v824_v55 = vadd.f32 %v764_v54, %v326_v51 }
 0x15b   : > { %856 = vst [vmem:[#allocation2 + $0xf0] sm:$0xff] %v824_v55  ;;  %v714_v56 = vpop.f32.mrf.mxu2 }
 0x15c   : > { %v803_v58 = vpop.f32.mrf.mxu3 }
 0x15d   : > { %v804_v59 = vadd.f32 %v803_v58, %v714_v56  ;;  %v677_v60 = vpop.f32.mrf.mxu0 }
 0x15e   : > { %v766_v62 = vpop.f32.mrf.mxu1 }
 0x15f   : > { %v840_v63 = vadd.f32 %v804_v59, %v342_v57  ;;  %v767_v0 = vadd.f32 %v766_v62, %v677_v60 }
 0x161   : > { %872 = vst [vmem:[#allocation2 + $0xf8] sm:$0xff] %v840_v63  ;;  %v825_v1 = vadd.f32 %v767_v0, %v327_v61 }
 0x163   : > { %857 = vst [vmem:[#allocation2 + $0x8] sm:$0xff] %v825_v1  ;;  %v717_v2 = vpop.f32.mrf.mxu2 }
 0x164   : > { %v806_v4 = vpop.f32.mrf.mxu3 }
 0x165   : > { %v807_v5 = vadd.f32 %v806_v4, %v717_v2  ;;  %v679_v6 = vpop.f32.mrf.mxu0 }
 0x166   : > { %v768_v8 = vpop.f32.mrf.mxu1 }
 0x167   : > { %v841_v9 = vadd.f32 %v807_v5, %v343_v3  ;;  %v769_v10 = vadd.f32 %v768_v8, %v679_v6 }
 0x169   : > { %873 = vst [vmem:[#allocation2 + $0x20] sm:$0xff] %v841_v9  ;;  %v826_v11 = vadd.f32 %v769_v10, %v328_v7 }
 0x16b   : > { %858 = vst [vmem:[#allocation2 + $0x78] sm:$0xff] %v826_v11  ;;  %v719_v12 = vpop.f32.mrf.mxu2 }
 0x16c   : > { %v808_v14 = vpop.f32.mrf.mxu3 }
 0x16d   : > { %v809_v15 = vadd.f32 %v808_v14, %v719_v12  ;;  %878 = sbr.rel (%p1440_p2) target bundleno = 597 (0x255), region = 48 }
 0x16f   : > { %v842_v16 = vadd.f32 %v809_v15, %v344_v13 }
 0x171   : > { %874 = vst [vmem:[#allocation2 + $0x98] sm:$0xff] %v842_v16 }
 0x172   : > { %v1530_v17 = vld [vmem:[%s2072_s2 + $0x38] sm:$0xff]  ;;  %v1529_v18 = vld [vmem:[%s2072_s2 + $0x30] sm:$0xff]  ;;  %v1528_v19 = vld [vmem:[%s2072_s2 + $0x28] sm:$0xff] }
 0x173   : > { %995 = vmatpush.bf16.msra.mxu0 %v1530_v17  ;;  %1547 = vmatpush.bf16.msra.mxu1 %v1530_v17  ;;  %v1527_v20 = vld [vmem:[%s2072_s2 + $0x20] sm:$0xff]  ;;  %v1526_v21 = vld [vmem:[%s2072_s2 + $0x18] sm:$0xff]  ;;  %v1525_v22 = vld [vmem:[%s2072_s2 + $0x10] sm:$0xff] }
 0x174   : > { %1548 = vmatpush.bf16.msra.mxu2 %v1530_v17  ;;  %1549 = vmatpush.bf16.msra.mxu3 %v1530_v17  ;;  %v1524_v23 = vld [vmem:[%s2072_s2 + $0x8] sm:$0xff]  ;;  %v1523_v24 = vld [vmem:[%s2072_s2] sm:$0xff]  ;;  %v879_v25 = vld [vmem:[#allocation2 + $0xb0] sm:$0xff] }
 0x175   : > { %v880_v26 = vld [vmem:[#allocation2] sm:$0xff]  ;;  %v888_v28 = vld [vmem:[#allocation2 + $0x88] sm:$0xff]  ;;  %v895_v29 = vld [vmem:[#allocation2 + $0x38] sm:$0xff] }
 0x176   : > { %v887_v27 = vld [vmem:[#allocation2 + $0x80] sm:$0xff]  ;;  %v896_v30 = vld [vmem:[#allocation2 + $0x58] sm:$0xff]  ;;  %v903_v31 = vld [vmem:[#allocation2 + $0xa8] sm:$0xff]  ;;  %v911_v33 = vpack.c.bf16 %v880_v26, %v879_v25 }
 0x177   : > { %996 = vmatpush.bf16.msra.mxu0 %v1529_v18  ;;  %1550 = vmatpush.bf16.msra.mxu1 %v1529_v18  ;;  %v904_v32 = vld [vmem:[#allocation2 + $0xd0] sm:$0xff]  ;;  %v915_v34 = vpack.c.bf16 %v888_v28, %v887_v27  ;;  %v919_v35 = vpack.c.bf16 %v896_v30, %v895_v29  ;;  %v881_v37 = vld [vmem:[#allocation2 + $0xd8] sm:$0xff]  ;;  %v889_v39 = vld [vmem:[#allocation2 + $0xe8] sm:$0xff] }
 0x178   : > { %1551 = vmatpush.bf16.msra.mxu2 %v1529_v18  ;;  %1552 = vmatpush.bf16.msra.mxu3 %v1529_v18  ;;  %v923_v36 = vpack.c.bf16 %v904_v32, %v903_v31  ;;  %v882_v38 = vld [vmem:[#allocation2 + $0x18] sm:$0xff]  ;;  %v897_v41 = vld [vmem:[#allocation2 + $0x40] sm:$0xff]  ;;  %v898_v42 = vld [vmem:[#allocation2 + $0xc8] sm:$0xff] }
 0x179   : > { %v890_v40 = vld [vmem:[#allocation2 + $0xb8] sm:$0xff]  ;;  %v905_v43 = vld [vmem:[#allocation2 + $0x10] sm:$0xff]  ;;  %v906_v44 = vld [vmem:[#allocation2 + $0x28] sm:$0xff]  ;;  %v912_v45 = vpack.c.bf16 %v882_v38, %v881_v37  ;;  %v920_v47 = vpack.c.bf16 %v898_v42, %v897_v41 }
 0x17a   : > { %v916_v46 = vpack.c.bf16 %v890_v40, %v889_v39  ;;  %v924_v48 = vpack.c.bf16 %v906_v44, %v905_v43  ;;  %v883_v49 = vld [vmem:[#allocation2 + $0x50] sm:$0xff]  ;;  %v884_v50 = vld [vmem:[#allocation2 + $0x68] sm:$0xff]  ;;  %v891_v51 = vld [vmem:[#allocation2 + $0x60] sm:$0xff] }
 0x17b   : > { %997 = vmatpush.bf16.msra.mxu0 %v1528_v19  ;;  %1553 = vmatpush.bf16.msra.mxu1 %v1528_v19  ;;  %v892_v52 = vld [vmem:[#allocation2 + $0xf0] sm:$0xff]  ;;  %v899_v53 = vld [vmem:[#allocation2 + $0xe0] sm:$0xff]  ;;  %v908_v56 = vld [vmem:[#allocation2 + $0xf8] sm:$0xff]  ;;  %v913_v57 = vpack.c.bf16 %v884_v50, %v883_v49 }
 0x17c   : > { %1554 = vmatpush.bf16.msra.mxu2 %v1528_v19  ;;  %1555 = vmatpush.bf16.msra.mxu3 %v1528_v19  ;;  %v900_v54 = vld [vmem:[#allocation2 + $0x90] sm:$0xff]  ;;  %v907_v55 = vld [vmem:[#allocation2 + $0xa0] sm:$0xff]  ;;  %v917_v58 = vpack.c.bf16 %v892_v52, %v891_v51  ;;  %v886_v62 = vld [vmem:[#allocation2 + $0x48] sm:$0xff] }
 0x17d   : > { %v921_v59 = vpack.c.bf16 %v900_v54, %v899_v53  ;;  %v925_v60 = vpack.c.bf16 %v908_v56, %v907_v55  ;;  %v885_v61 = vld [vmem:[#allocation2 + $0x30] sm:$0xff]  ;;  %v893_v63 = vld [vmem:[#allocation2 + $0x8] sm:$0xff]  ;;  %v894_v0 = vld [vmem:[#allocation2 + $0x78] sm:$0xff] }
 0x17e   : > { %v901_v1 = vld [vmem:[#allocation2 + $0x70] sm:$0xff]  ;;  %v902_v2 = vld [vmem:[#allocation2 + $0xc0] sm:$0xff]  ;;  %v910_v4 = vld [vmem:[#allocation2 + $0x98] sm:$0xff]  ;;  %v914_v5 = vpack.c.bf16 %v886_v62, %v885_v61  ;;  %v918_v6 = vpack.c.bf16 %v894_v0, %v893_v63 }
 0x17f   : > { %998 = vmatpush.bf16.msra.mxu0 %v1527_v20  ;;  %1556 = vmatpush.bf16.msra.mxu1 %v1527_v20  ;;  %v909_v3 = vld [vmem:[#allocation2 + $0x20] sm:$0xff]  ;;  %v922_v7 = vpack.c.bf16 %v902_v2, %v901_v1 }
 0x180   : > { %1557 = vmatpush.bf16.msra.mxu2 %v1527_v20  ;;  %1558 = vmatpush.bf16.msra.mxu3 %v1527_v20  ;;  %v926_v8 = vpack.c.bf16 %v910_v4, %v909_v3  ;;  %v1980_v9 = vld [vmem:[%s2073_s3] ss:$0 sm:$0xff] }
 0x183   : > { %999 = vmatpush.bf16.msra.mxu0 %v1526_v21  ;;  %1559 = vmatpush.bf16.msra.mxu1 %v1526_v21 }
 0x184   : > { %1560 = vmatpush.bf16.msra.mxu2 %v1526_v21  ;;  %1561 = vmatpush.bf16.msra.mxu3 %v1526_v21 }
 0x187   : > { %1000 = vmatpush.bf16.msra.mxu0 %v1525_v22  ;;  %1562 = vmatpush.bf16.msra.mxu1 %v1525_v22 }
 0x188   : > { %1563 = vmatpush.bf16.msra.mxu2 %v1525_v22  ;;  %1564 = vmatpush.bf16.msra.mxu3 %v1525_v22 }
 0x18b   : > { %1001 = vmatpush.bf16.msra.mxu0 %v1524_v23  ;;  %1565 = vmatpush.bf16.msra.mxu1 %v1524_v23 }
 0x18c   : > { %1566 = vmatpush.bf16.msra.mxu2 %v1524_v23  ;;  %1567 = vmatpush.bf16.msra.mxu3 %v1524_v23 }
 0x18f   : > { %1002 = vmatpush.bf16.msra.mxu0 %v1523_v24  ;;  %1568 = vmatpush.bf16.msra.mxu1 %v1523_v24 }
 0x190   : > { %1569 = vmatpush.bf16.msra.mxu2 %v1523_v24  ;;  %1570 = vmatpush.bf16.msra.mxu3 %v1523_v24 }
 0x192   : > { %1003 = vmatmul.bf16.vlgmr.msra.gmra.mxu0 %v911_v33  ;;  %1023 = vmatmul.bf16.vlgmr.msra.gmra.mxu1 %v915_v34 }
 0x193   : > { %1043 = vmatmul.bf16.vlgmr.msra.gmra.mxu2 %v919_v35  ;;  %1063 = vmatmul.bf16.vlgmr.msra.gmra.mxu3 %v923_v36 }
 0x1a2   : > { %1008 = vmatmul.bf16.gmra.mxu0 %v912_v45  ;;  %1028 = vmatmul.bf16.gmra.mxu1 %v916_v46 }
 0x1a3   : > { %1048 = vmatmul.bf16.gmra.mxu2 %v920_v47  ;;  %1068 = vmatmul.bf16.gmra.mxu3 %v924_v48 }
 0x1b2   : > { %1013 = vmatmul.bf16.gmra.mxu0 %v913_v57  ;;  %1033 = vmatmul.bf16.gmra.mxu1 %v917_v58 }
 0x1b3   : > { %1053 = vmatmul.bf16.gmra.mxu2 %v921_v59  ;;  %1073 = vmatmul.bf16.gmra.mxu3 %v925_v60 }
 0x1c2   : > { %1018 = vmatmul.bf16.gmra.mxu0 %v914_v5  ;;  %1038 = vmatmul.bf16.gmra.mxu1 %v918_v6 }
 0x1c3   : > { %1058 = vmatmul.bf16.gmra.mxu2 %v922_v7  ;;  %1078 = vmatmul.bf16.gmra.mxu3 %v926_v8 }
 0x20f   : > { %v1004_v10 = vpop.f32.mrf.mxu0  ;;  %v1024_v11 = vpop.f32.mrf.mxu1 }
 0x210   : > { %v1005_v12 = vadd.f32 %v1980_v9, %v1004_v10  ;;  %v1025_v13 = vadd.f32 %v1980_v9, %v1024_v11 }
 0x212   : > { %v1084_v14 = vmax.f32 %v1005_v12, 0.0  ;;  %v1092_v15 = vmax.f32 %v1025_v13, 0.0 }
 0x214   : > { %1116 = vst [vmem:[%s1863_s12] sm:$0xff] %v1084_v14 }
 0x215   : > { %1124 = vst [vmem:[%s1863_s12 + $0x40] sm:$0xff] %v1092_v15 }
 0x216   : > { %v1044_v16 = vpop.f32.mrf.mxu2  ;;  %v1064_v17 = vpop.f32.mrf.mxu3 }
 0x217   : > { %v1045_v18 = vadd.f32 %v1980_v9, %v1044_v16  ;;  %v1065_v19 = vadd.f32 %v1980_v9, %v1064_v17  ;;  %v1006_v20 = vpop.f32.mrf.mxu0  ;;  %v1026_v21 = vpop.f32.mrf.mxu1 }
 0x218   : > { %v1007_v22 = vadd.f32 %v1980_v9, %v1006_v20  ;;  %v1027_v23 = vadd.f32 %v1980_v9, %v1026_v21 }
 0x219   : > { %v1100_v24 = vmax.f32 %v1045_v18, 0.0  ;;  %v1108_v25 = vmax.f32 %v1065_v19, 0.0 }
 0x21a   : > { %v1085_v26 = vmax.f32 %v1007_v22, 0.0  ;;  %v1093_v27 = vmax.f32 %v1027_v23, 0.0 }
 0x21b   : > { %1132 = vst [vmem:[%s1863_s12 + $0x80] sm:$0xff] %v1100_v24 }
 0x21c   : > { %1140 = vst [vmem:[%s1863_s12 + $0xc0] sm:$0xff] %v1108_v25 }
 0x21d   : > { %1117 = vst [vmem:[%s1863_s12 + $0x8] sm:$0xff] %v1085_v26 }
 0x21e   : > { %1125 = vst [vmem:[%s1863_s12 + $0x48] sm:$0xff] %v1093_v27  ;;  %v1046_v28 = vpop.f32.mrf.mxu2  ;;  %v1066_v29 = vpop.f32.mrf.mxu3 }
 0x21f   : > { %v1047_v30 = vadd.f32 %v1980_v9, %v1046_v28  ;;  %v1067_v31 = vadd.f32 %v1980_v9, %v1066_v29  ;;  %v1009_v32 = vpop.f32.mrf.mxu0  ;;  %v1029_v33 = vpop.f32.mrf.mxu1 }
 0x220   : > { %v1010_v34 = vadd.f32 %v1980_v9, %v1009_v32  ;;  %v1030_v35 = vadd.f32 %v1980_v9, %v1029_v33 }
 0x221   : > { %v1101_v36 = vmax.f32 %v1047_v30, 0.0  ;;  %v1109_v37 = vmax.f32 %v1067_v31, 0.0 }
 0x222   : > { %v1086_v38 = vmax.f32 %v1010_v34, 0.0  ;;  %v1094_v39 = vmax.f32 %v1030_v35, 0.0 }
 0x223   : > { %1133 = vst [vmem:[%s1863_s12 + $0x88] sm:$0xff] %v1101_v36 }
 0x224   : > { %1141 = vst [vmem:[%s1863_s12 + $0xc8] sm:$0xff] %v1109_v37 }
 0x225   : > { %1118 = vst [vmem:[%s1863_s12 + $0x10] sm:$0xff] %v1086_v38 }
 0x226   : > { %1126 = vst [vmem:[%s1863_s12 + $0x50] sm:$0xff] %v1094_v39  ;;  %v1049_v40 = vpop.f32.mrf.mxu2  ;;  %v1069_v41 = vpop.f32.mrf.mxu3 }
 0x227   : > { %v1050_v42 = vadd.f32 %v1980_v9, %v1049_v40  ;;  %v1070_v43 = vadd.f32 %v1980_v9, %v1069_v41  ;;  %v1011_v44 = vpop.f32.mrf.mxu0  ;;  %v1031_v45 = vpop.f32.mrf.mxu1 }
 0x228   : > { %v1012_v46 = vadd.f32 %v1980_v9, %v1011_v44  ;;  %v1032_v47 = vadd.f32 %v1980_v9, %v1031_v45 }
 0x229   : > { %v1102_v48 = vmax.f32 %v1050_v42, 0.0  ;;  %v1110_v49 = vmax.f32 %v1070_v43, 0.0 }
 0x22a   : > { %v1087_v50 = vmax.f32 %v1012_v46, 0.0  ;;  %v1095_v51 = vmax.f32 %v1032_v47, 0.0 }
 0x22b   : > { %1134 = vst [vmem:[%s1863_s12 + $0x90] sm:$0xff] %v1102_v48 }
 0x22c   : > { %1142 = vst [vmem:[%s1863_s12 + $0xd0] sm:$0xff] %v1110_v49 }
 0x22d   : > { %1119 = vst [vmem:[%s1863_s12 + $0x18] sm:$0xff] %v1087_v50 }
 0x22e   : > { %1127 = vst [vmem:[%s1863_s12 + $0x58] sm:$0xff] %v1095_v51  ;;  %v1051_v52 = vpop.f32.mrf.mxu2  ;;  %v1071_v53 = vpop.f32.mrf.mxu3 }
 0x22f   : > { %v1052_v54 = vadd.f32 %v1980_v9, %v1051_v52  ;;  %v1072_v55 = vadd.f32 %v1980_v9, %v1071_v53  ;;  %v1014_v56 = vpop.f32.mrf.mxu0  ;;  %v1034_v57 = vpop.f32.mrf.mxu1 }
 0x230   : > { %v1015_v58 = vadd.f32 %v1980_v9, %v1014_v56  ;;  %v1035_v59 = vadd.f32 %v1980_v9, %v1034_v57 }
 0x231   : > { %v1103_v60 = vmax.f32 %v1052_v54, 0.0  ;;  %v1111_v61 = vmax.f32 %v1072_v55, 0.0 }
 0x232   : > { %v1088_v62 = vmax.f32 %v1015_v58, 0.0  ;;  %v1096_v63 = vmax.f32 %v1035_v59, 0.0 }
 0x233   : > { %1135 = vst [vmem:[%s1863_s12 + $0x98] sm:$0xff] %v1103_v60 }
 0x234   : > { %1143 = vst [vmem:[%s1863_s12 + $0xd8] sm:$0xff] %v1111_v61 }
 0x235   : > { %1120 = vst [vmem:[%s1863_s12 + $0x20] sm:$0xff] %v1088_v62 }
 0x236   : > { %1128 = vst [vmem:[%s1863_s12 + $0x60] sm:$0xff] %v1096_v63  ;;  %v1054_v0 = vpop.f32.mrf.mxu2  ;;  %v1074_v1 = vpop.f32.mrf.mxu3 }
 0x237   : > { %v1055_v2 = vadd.f32 %v1980_v9, %v1054_v0  ;;  %v1075_v3 = vadd.f32 %v1980_v9, %v1074_v1  ;;  %v1016_v4 = vpop.f32.mrf.mxu0  ;;  %v1036_v5 = vpop.f32.mrf.mxu1 }
 0x238   : > { %v1017_v6 = vadd.f32 %v1980_v9, %v1016_v4  ;;  %v1037_v7 = vadd.f32 %v1980_v9, %v1036_v5 }
 0x239   : > { %v1104_v8 = vmax.f32 %v1055_v2, 0.0  ;;  %v1112_v10 = vmax.f32 %v1075_v3, 0.0 }
 0x23a   : > { %v1089_v11 = vmax.f32 %v1017_v6, 0.0  ;;  %v1097_v12 = vmax.f32 %v1037_v7, 0.0 }
 0x23b   : > { %1136 = vst [vmem:[%s1863_s12 + $0xa0] sm:$0xff] %v1104_v8 }
 0x23c   : > { %1144 = vst [vmem:[%s1863_s12 + $0xe0] sm:$0xff] %v1112_v10 }
 0x23d   : > { %1121 = vst [vmem:[%s1863_s12 + $0x28] sm:$0xff] %v1089_v11 }
 0x23e   : > { %1129 = vst [vmem:[%s1863_s12 + $0x68] sm:$0xff] %v1097_v12  ;;  %v1056_v13 = vpop.f32.mrf.mxu2  ;;  %v1076_v14 = vpop.f32.mrf.mxu3 }
 0x23f   : > { %v1057_v15 = vadd.f32 %v1980_v9, %v1056_v13  ;;  %v1077_v16 = vadd.f32 %v1980_v9, %v1076_v14  ;;  %v1019_v17 = vpop.f32.mrf.mxu0  ;;  %v1039_v18 = vpop.f32.mrf.mxu1 }
 0x240   : > { %v1020_v19 = vadd.f32 %v1980_v9, %v1019_v17  ;;  %v1040_v20 = vadd.f32 %v1980_v9, %v1039_v18 }
 0x241   : > { %v1105_v21 = vmax.f32 %v1057_v15, 0.0  ;;  %v1113_v22 = vmax.f32 %v1077_v16, 0.0 }
 0x242   : > { %v1090_v23 = vmax.f32 %v1020_v19, 0.0  ;;  %v1098_v24 = vmax.f32 %v1040_v20, 0.0 }
 0x243   : > { %1137 = vst [vmem:[%s1863_s12 + $0xa8] sm:$0xff] %v1105_v21 }
 0x244   : > { %1145 = vst [vmem:[%s1863_s12 + $0xe8] sm:$0xff] %v1113_v22 }
 0x245   : > { %1122 = vst [vmem:[%s1863_s12 + $0x30] sm:$0xff] %v1090_v23 }
 0x246   : > { %1130 = vst [vmem:[%s1863_s12 + $0x70] sm:$0xff] %v1098_v24  ;;  %v1059_v25 = vpop.f32.mrf.mxu2  ;;  %v1079_v26 = vpop.f32.mrf.mxu3 }
 0x247   : > { %v1060_v27 = vadd.f32 %v1980_v9, %v1059_v25  ;;  %v1080_v28 = vadd.f32 %v1980_v9, %v1079_v26  ;;  %v1021_v29 = vpop.f32.mrf.mxu0  ;;  %v1041_v30 = vpop.f32.mrf.mxu1 }
 0x248   : > { %v1022_v31 = vadd.f32 %v1980_v9, %v1021_v29  ;;  %v1042_v32 = vadd.f32 %v1980_v9, %v1041_v30 }
 0x249   : > { %v1106_v33 = vmax.f32 %v1060_v27, 0.0  ;;  %v1114_v34 = vmax.f32 %v1080_v28, 0.0 }
 0x24a   : > { %v1091_v35 = vmax.f32 %v1022_v31, 0.0  ;;  %v1099_v36 = vmax.f32 %v1042_v32, 0.0 }
 0x24b   : > { %1138 = vst [vmem:[%s1863_s12 + $0xb0] sm:$0xff] %v1106_v33 }
 0x24c   : > { %1146 = vst [vmem:[%s1863_s12 + $0xf0] sm:$0xff] %v1114_v34 }
 0x24d   : > { %1123 = vst [vmem:[%s1863_s12 + $0x38] sm:$0xff] %v1091_v35 }
 0x24e   : > { %1131 = vst [vmem:[%s1863_s12 + $0x78] sm:$0xff] %v1099_v36  ;;  %v1061_v37 = vpop.f32.mrf.mxu2  ;;  %v1081_v38 = vpop.f32.mrf.mxu3 }
 0x24f   : > { %v1062_v39 = vadd.f32 %v1980_v9, %v1061_v37  ;;  %v1082_v40 = vadd.f32 %v1980_v9, %v1081_v38 }
 0x251   : > { %v1107_v41 = vmax.f32 %v1062_v39, 0.0  ;;  %v1115_v42 = vmax.f32 %v1082_v40, 0.0 }
 0x253   : > { %1139 = vst [vmem:[%s1863_s12 + $0xb8] sm:$0xff] %v1107_v41 }
 0x254   : > { %1147 = vst [vmem:[%s1863_s12 + $0xf8] sm:$0xff] %v1115_v42 }
 0x255 PF: > { %s17_s22 = sadd.s32 1, %s1744_s22   ;;  %s2081_s23 = sld [smem:[#allocation6_spill]] }
 0x256   : > { %p14_p3 = scmp.ge.s32.totalorder %s17_s22, 11   ;;  %s2082_s27 = sld [smem:[#allocation7_spill]] }
 0x257   : > { %s2083_s15 = smov %s1720_s16  ;;  %s2084_s16 = smov %s1724_s17 }
 0x258   : > { %s2085_s17 = smov %s1842_s9  ;;  %s2086_s18 = smov %s1736_s20 }
 0x259   : > { %s2087_s19 = smov %s1740_s21  ;;  %16 = sbr.rel (!%p14_p3) target bundleno = 5 (0x5), region = 85 }
 0x25b   : > { %s2088_s20 = smov %s2081_s23 }
 0x25c   : > { %s2089_s21 = smov %s2082_s27 }
 0x25e   :  { %1170 = vsyncpa [#allocation4], 1 }
 0x25f   :  { %1172 = vsyncpa [#allocation4 + $0x1], 1 }

// kernel: _lambda_.3
= control target key start
LH: loop header
LB: loop body
LE: loop exit
PB: predicated region body
PF: predicated region fallthrough
CT: control target
= control target key end

     0   :  { %s1580_s12 = smov 0   ;;  %s1582_s13 = smov 0   ;;  %s2025_s0 = inlined_call_operand.vmem [shape: bf16[768,768], index: 0, kind: input, shape index: {}]   ;;  %s2026_s1 = inlined_call_operand.vmem [shape: bf16[768,128], index: 1, kind: input, shape index: {}]   ;;  %s2027_s2 = inlined_call_operand.vmem [shape: f32[1,128], index: 2, kind: input, shape index: {}]   ;;  %s2028_s3 = inlined_call_operand.vmem [shape: f32[768,128], index: 3, kind: output, shape index: {}]  }
   0x1   :  { %s1584_s14 = smov 0   ;;  %s1586_s15 = smov 0  }
   0x2   :  { %s1588_s16 = smov 0   ;;  %s1590_s17 = smov 0  }
   0x3   :  { %s1592_s18 = smov 0  }
   0x4 LB: > { %s22_s19 = sadd.s32 1, %s1549_s16  ;;  %s25_s20 = sadd.s32 1, %s1553_s17  ;;  %s1557_s18 = sphi %s1592_s18, %s13_s18   ;;  %s1553_s17 = sphi %s1590_s17, %s2034_s17   ;;  %s1549_s16 = sphi %s1588_s16, %s2033_s16   ;;  %s1545_s15 = sphi %s1586_s15, %s2032_s15   ;;  %s1541_s14 = sphi %s1584_s14, %s2031_s14   ;;  %s1537_s13 = sphi %s1582_s13, %s2030_s13   ;;  %s1533_s12 = sphi %s1580_s12, %s2029_s12  }
   0x5   : > { %p23_p0 = scmp.ge.s32.totalorder %s22_s19, 3  ;;  %p41_p1 = scmp.ne.s32.totalorder %s1537_s13, %s1533_s12 }
   0x6   : > { %p42_p2 = scmp.eq.s32.totalorder %s1557_s18, 0  ;;  %s34_s24 = sadd.s32 1, %s1537_s13 }
   0x7   : > { %s2036_s19 = smov (%p23_p0, %s22_s19), 0  ;;  %s2038_s20 = smov (!%p23_p0, %s25_s20), %s1553_s17 }
   0x8   : > { %p43_p3 = por %p42_p2, %p41_p1  ;;  %p27_p4 = scmp.ge.s32.totalorder %s2038_s20, 3 }
   0x9   : > { %s30_s21 = ssub.s32 %s1549_s16, %s2036_s19  ;;  %p1172_p6 = scmp.ge.s32.totalorder %s1557_s18, 9 }
   0xa   : > { %s2040_s20 = smov (%p27_p4, %s2038_s20), 0 }
   0xb   : > { %s29_s22 = ssub.s32 %s1553_s17, %s2040_s20  ;;  %141 = sbr.rel (%p1172_p6) target bundleno = 56 (0x38), region = 24 }
   0xc   : > { %s31_s23 = sor.u32 %s30_s21, %s29_s22 }
   0xd   : > { %p32_p5 = scmp.eq.s32.totalorder %s31_s23, 0 }
   0xf   : > { %s1631_s25 = scalar_select %p32_p5, %s1537_s13, %s34_s24  }
  0x10   : > { %144 = sbr.rel (!%p43_p3) target bundleno = 56 (0x38), region = 28  ;;  %s146_s26 = sand.u32 (%p43_p3), 1, %s1537_s13  }
  0x11   : > { %s1175_s27 = sshll.u32 (%p43_p3), %s1549_s16, 1  ;;  %s1173_s28 = sshll.u32 (%p43_p3), %s146_s26, 8 }
  0x12   : > { %s1444_s29 = smul.u32 (%p43_p3), 192, %s1553_s17  ;;  %s1645_s8 = scalar_lea.vmem (%p43_p3), [#allocation2], %s1173_s28 }
  0x14   : > { %s152_s30 = sadd.s32 (%p43_p3), %s1444_s29, %s1175_s27 }
  0x15   : > { %s1177_s4 = sshll.u32 %s152_s30, 2 }
  0x16   : > { %s1640_s7 = scalar_lea.vmem %s2025_s0, %s1177_s4 }
  0x17   : > { %v245_v0 = vld [vmem:[%s1640_s7] sm:$0xff]  ;;  %v247_v1 = vld [vmem:[%s1640_s7 + $0x18] sm:$0xff]  ;;  %v249_v2 = vld [vmem:[%s1640_s7 + $0x30] sm:$0xff] }
  0x18   : > { %246 = vst [vmem:[%s1645_s8] sm:$0xff] %v245_v0  ;;  %v251_v3 = vld [vmem:[%s1640_s7 + $0x48] sm:$0xff]  ;;  %v253_v4 = vld [vmem:[%s1640_s7 + $0x60] sm:$0xff]  ;;  %v255_v5 = vld [vmem:[%s1640_s7 + $0x78] sm:$0xff] }
  0x19   : > { %248 = vst [vmem:[%s1645_s8 + $0x8] sm:$0xff] %v247_v1  ;;  %v257_v6 = vld [vmem:[%s1640_s7 + $0x90] sm:$0xff]  ;;  %v259_v7 = vld [vmem:[%s1640_s7 + $0xa8] sm:$0xff]  ;;  %v261_v8 = vld [vmem:[%s1640_s7 + $0xc0] sm:$0xff] }
  0x1a   : > { %250 = vst [vmem:[%s1645_s8 + $0x10] sm:$0xff] %v249_v2  ;;  %v263_v9 = vld [vmem:[%s1640_s7 + $0xd8] sm:$0xff]  ;;  %v265_v10 = vld [vmem:[%s1640_s7 + $0xf0] sm:$0xff]  ;;  %v267_v11 = vld [vmem:[%s1640_s7 + $0x108] sm:$0xff] }
  0x1b   : > { %252 = vst [vmem:[%s1645_s8 + $0x18] sm:$0xff] %v251_v3  ;;  %v269_v12 = vld [vmem:[%s1640_s7 + $0x120] sm:$0xff]  ;;  %v271_v13 = vld [vmem:[%s1640_s7 + $0x138] sm:$0xff]  ;;  %v273_v14 = vld [vmem:[%s1640_s7 + $0x150] sm:$0xff] }
  0x1c   : > { %254 = vst [vmem:[%s1645_s8 + $0x20] sm:$0xff] %v253_v4  ;;  %v275_v15 = vld [vmem:[%s1640_s7 + $0x168] sm:$0xff]  ;;  %v277_v16 = vld [vmem:[%s1640_s7 + $0x180] sm:$0xff]  ;;  %v279_v17 = vld [vmem:[%s1640_s7 + $0x198] sm:$0xff] }
  0x1d   : > { %256 = vst [vmem:[%s1645_s8 + $0x28] sm:$0xff] %v255_v5  ;;  %v281_v18 = vld [vmem:[%s1640_s7 + $0x1b0] sm:$0xff]  ;;  %v283_v19 = vld [vmem:[%s1640_s7 + $0x1c8] sm:$0xff]  ;;  %v285_v20 = vld [vmem:[%s1640_s7 + $0x1e0] sm:$0xff] }
  0x1e   : > { %258 = vst [vmem:[%s1645_s8 + $0x30] sm:$0xff] %v257_v6  ;;  %v287_v21 = vld [vmem:[%s1640_s7 + $0x1f8] sm:$0xff]  ;;  %v289_v22 = vld [vmem:[%s1640_s7 + $0x210] sm:$0xff]  ;;  %v291_v23 = vld [vmem:[%s1640_s7 + $0x228] sm:$0xff] }
  0x1f   : > { %260 = vst [vmem:[%s1645_s8 + $0x38] sm:$0xff] %v259_v7  ;;  %v293_v24 = vld [vmem:[%s1640_s7 + $0x240] sm:$0xff]  ;;  %v295_v25 = vld [vmem:[%s1640_s7 + $0x258] sm:$0xff]  ;;  %v297_v26 = vld [vmem:[%s1640_s7 + $0x270] sm:$0xff] }
  0x20   : > { %262 = vst [vmem:[%s1645_s8 + $0x40] sm:$0xff] %v261_v8  ;;  %v299_v27 = vld [vmem:[%s1640_s7 + $0x288] sm:$0xff]  ;;  %v301_v28 = vld [vmem:[%s1640_s7 + $0x2a0] sm:$0xff]  ;;  %v303_v29 = vld [vmem:[%s1640_s7 + $0x2b8] sm:$0xff] }
  0x21   : > { %264 = vst [vmem:[%s1645_s8 + $0x48] sm:$0xff] %v263_v9  ;;  %v305_v30 = vld [vmem:[%s1640_s7 + $0x2d0] sm:$0xff]  ;;  %v307_v31 = vld [vmem:[%s1640_s7 + $0x2e8] sm:$0xff] }
  0x22   : > { %266 = vst [vmem:[%s1645_s8 + $0x50] sm:$0xff] %v265_v10 }
  0x23   : > { %268 = vst [vmem:[%s1645_s8 + $0x58] sm:$0xff] %v267_v11 }
  0x24   : > { %270 = vst [vmem:[%s1645_s8 + $0x60] sm:$0xff] %v269_v12 }
  0x25   : > { %272 = vst [vmem:[%s1645_s8 + $0x68] sm:$0xff] %v271_v13 }
  0x26   : > { %274 = vst [vmem:[%s1645_s8 + $0x70] sm:$0xff] %v273_v14 }
  0x27   : > { %276 = vst [vmem:[%s1645_s8 + $0x78] sm:$0xff] %v275_v15 }
  0x28   : > { %278 = vst [vmem:[%s1645_s8 + $0x80] sm:$0xff] %v277_v16 }
  0x29   : > { %280 = vst [vmem:[%s1645_s8 + $0x88] sm:$0xff] %v279_v17 }
  0x2a   : > { %282 = vst [vmem:[%s1645_s8 + $0x90] sm:$0xff] %v281_v18 }
  0x2b   : > { %284 = vst [vmem:[%s1645_s8 + $0x98] sm:$0xff] %v283_v19 }
  0x2c   : > { %286 = vst [vmem:[%s1645_s8 + $0xa0] sm:$0xff] %v285_v20 }
  0x2d   : > { %288 = vst [vmem:[%s1645_s8 + $0xa8] sm:$0xff] %v287_v21 }
  0x2e   : > { %290 = vst [vmem:[%s1645_s8 + $0xb0] sm:$0xff] %v289_v22 }
  0x2f   : > { %292 = vst [vmem:[%s1645_s8 + $0xb8] sm:$0xff] %v291_v23 }
  0x30   : > { %294 = vst [vmem:[%s1645_s8 + $0xc0] sm:$0xff] %v293_v24 }
  0x31   : > { %296 = vst [vmem:[%s1645_s8 + $0xc8] sm:$0xff] %v295_v25 }
  0x32   : > { %298 = vst [vmem:[%s1645_s8 + $0xd0] sm:$0xff] %v297_v26 }
  0x33   : > { %300 = vst [vmem:[%s1645_s8 + $0xd8] sm:$0xff] %v299_v27 }
  0x34   : > { %302 = vst [vmem:[%s1645_s8 + $0xe0] sm:$0xff] %v301_v28 }
  0x35   : > { %304 = vst [vmem:[%s1645_s8 + $0xe8] sm:$0xff] %v303_v29 }
  0x36   : > { %306 = vst [vmem:[%s1645_s8 + $0xf0] sm:$0xff] %v305_v30 }
  0x37   : > { %308 = vst [vmem:[%s1645_s8 + $0xf8] sm:$0xff] %v307_v31 }
  0x38 PF: > { %p1178_p7 = scmp.ge.s32.totalorder %s1557_s18, 1  ;;  %p313_p8 = scmp.lt.s32.totalorder %s1557_s18, 10 }
  0x3a   : > { %p314_p9 = pnand %p1178_p7, %p313_p8 }
  0x3b   : > { %s320_s9 = sand.u32 (!%p314_p9), 1, %s1533_s12   ;;  %s1180_s10 = sshll.u32 (!%p314_p9), %s1545_s15, 5 }
  0x3c   : > { %317 = sbr.rel (%p314_p9) target bundleno = 433 (0x1b1), region = 66  ;;  %s1179_s11 = sshll.u32 (!%p314_p9), %s320_s9, 8 }
  0x3d   : > { %p346_p10 = scmp.lt.s32.totalorder (!%p314_p9), %s1180_s10, 95  ;;  %s1717_s26 = scalar_lea.vmem (!%p314_p9), [#allocation2], %s1179_s11 }
  0x3e   : > { %p1182_p11 = scmp.ne.s32.totalorder (!%p314_p9), %s1541_s14, 0 }
  0x41   : > { %s2042_s10 = smov (!%p346_p10, %s1180_s10), 95  ;;  %354 = sbr.rel (%p1182_p11) target bundleno = 103 (0x67), region = 74 }
  0x42   : > { %s1181_s21 = sshll.u32 %s2042_s10, 3 }
  0x43   : > { %s1715_s24 = scalar_lea.vmem %s2028_s3, %s1181_s21 }
  0x46   : > { %v1559_v32 = vmov 0.0  }
  0x47   : > { %355 = vst [vmem:[%s1715_s24] sm:$0xff] %v1559_v32 }
  0x48   : > { %356 = vst [vmem:[%s1715_s24 + $0x8] sm:$0xff] %v1559_v32 }
  0x49   : > { %357 = vst [vmem:[%s1715_s24 + $0x10] sm:$0xff] %v1559_v32 }
  0x4a   : > { %358 = vst [vmem:[%s1715_s24 + $0x18] sm:$0xff] %v1559_v32 }
  0x4b   : > { %359 = vst [vmem:[%s1715_s24 + $0x20] sm:$0xff] %v1559_v32 }
  0x4c   : > { %360 = vst [vmem:[%s1715_s24 + $0x28] sm:$0xff] %v1559_v32 }
  0x4d   : > { %361 = vst [vmem:[%s1715_s24 + $0x30] sm:$0xff] %v1559_v32 }
  0x4e   : > { %362 = vst [vmem:[%s1715_s24 + $0x38] sm:$0xff] %v1559_v32 }
  0x4f   : > { %363 = vst [vmem:[%s1715_s24 + $0x40] sm:$0xff] %v1559_v32 }
  0x50   : > { %364 = vst [vmem:[%s1715_s24 + $0x48] sm:$0xff] %v1559_v32 }
  0x51   : > { %365 = vst [vmem:[%s1715_s24 + $0x50] sm:$0xff] %v1559_v32 }
  0x52   : > { %366 = vst [vmem:[%s1715_s24 + $0x58] sm:$0xff] %v1559_v32 }
  0x53   : > { %367 = vst [vmem:[%s1715_s24 + $0x60] sm:$0xff] %v1559_v32 }
  0x54   : > { %368 = vst [vmem:[%s1715_s24 + $0x68] sm:$0xff] %v1559_v32 }
  0x55   : > { %369 = vst [vmem:[%s1715_s24 + $0x70] sm:$0xff] %v1559_v32 }
  0x56   : > { %370 = vst [vmem:[%s1715_s24 + $0x78] sm:$0xff] %v1559_v32 }
  0x57   : > { %371 = vst [vmem:[%s1715_s24 + $0x80] sm:$0xff] %v1559_v32 }
  0x58   : > { %372 = vst [vmem:[%s1715_s24 + $0x88] sm:$0xff] %v1559_v32 }
  0x59   : > { %373 = vst [vmem:[%s1715_s24 + $0x90] sm:$0xff] %v1559_v32 }
  0x5a   : > { %374 = vst [vmem:[%s1715_s24 + $0x98] sm:$0xff] %v1559_v32 }
  0x5b   : > { %375 = vst [vmem:[%s1715_s24 + $0xa0] sm:$0xff] %v1559_v32 }
  0x5c   : > { %376 = vst [vmem:[%s1715_s24 + $0xa8] sm:$0xff] %v1559_v32 }
  0x5d   : > { %377 = vst [vmem:[%s1715_s24 + $0xb0] sm:$0xff] %v1559_v32 }
  0x5e   : > { %378 = vst [vmem:[%s1715_s24 + $0xb8] sm:$0xff] %v1559_v32 }
  0x5f   : > { %379 = vst [vmem:[%s1715_s24 + $0xc0] sm:$0xff] %v1559_v32 }
  0x60   : > { %380 = vst [vmem:[%s1715_s24 + $0xc8] sm:$0xff] %v1559_v32 }
  0x61   : > { %381 = vst [vmem:[%s1715_s24 + $0xd0] sm:$0xff] %v1559_v32 }
  0x62   : > { %382 = vst [vmem:[%s1715_s24 + $0xd8] sm:$0xff] %v1559_v32 }
  0x63   : > { %383 = vst [vmem:[%s1715_s24 + $0xe0] sm:$0xff] %v1559_v32 }
  0x64   : > { %384 = vst [vmem:[%s1715_s24 + $0xe8] sm:$0xff] %v1559_v32 }
  0x65   : > { %385 = vst [vmem:[%s1715_s24 + $0xf0] sm:$0xff] %v1559_v32 }
  0x66   : > { %386 = vst [vmem:[%s1715_s24 + $0xf8] sm:$0xff] %v1559_v32 }
  0x67 PF: > { %s1183_s12 = sshll.u32 %s1541_s14, 8  ;;  %v1187_v47 = vld [vmem:[%s1717_s26] sm:$0xf]  ;;  %v1397_v49 = vld [vmem:[%s1717_s26 + $0x4] sm:$0xf0]  ;;  %p1377_p12 = scmp.ne.s32.totalorder %s1541_s14, 2 }
  0x68   : > { %s388_s15 = sshra.s32 %s1183_s12, 3  ;;  %v1251_v50 = vld [vmem:[%s1717_s26 + $0x80] sm:$0xf]  ;;  %v1413_v52 = vld [vmem:[%s1717_s26 + $0x84] sm:$0xf0]  ;;  %v1188_v57 = vor.u32 %v1397_v49, %v1187_v47 }
  0x69   : > { %s1184_s27 = sshll.u32 %s388_s15, 2  ;;  %v1396_v53 = vld [vmem:[%s1717_s26 + $0x4] sm:$0xf]  ;;  %v1189_v54 = vld [vmem:[%s1717_s26 + $0x8] sm:$0xf0]  ;;  %v1252_v58 = vor.u32 %v1413_v52, %v1251_v50 }
  0x6a   : > { %s1756_s30 = scalar_lea.vmem %s2026_s1, %s1184_s27  ;;  %v1412_v55 = vld [vmem:[%s1717_s26 + $0x84] sm:$0xf]  ;;  %v1253_v56 = vld [vmem:[%s1717_s26 + $0x88] sm:$0xf0]  ;;  %v1192_v59 = vor.u32 %v1396_v53, %v1189_v54  ;;  %v1195_v61 = vld [vmem:[%s1717_s26 + $0x10] sm:$0xf] }
  0x6b   : > { %v1387_v33 = vld [vmem:[%s1756_s30 + $0x38] sm:$0xff]  ;;  %v1386_v35 = vld [vmem:[%s1756_s30 + $0x30] sm:$0xff]  ;;  %v1385_v37 = vld [vmem:[%s1756_s30 + $0x28] sm:$0xff]  ;;  %v1256_v60 = vor.u32 %v1412_v55, %v1253_v56 }
  0x6c   : > { %v1395_v34 = vld [vmem:[%s1756_s30 + $0x78] sm:$0xff]  ;;  %744 = vmatpush.bf16.msra.mxu0 %v1387_v33  ;;  %1428 = vmatpush.bf16.msra.mxu2 %v1387_v33  ;;  %v1394_v36 = vld [vmem:[%s1756_s30 + $0x70] sm:$0xff]  ;;  %v1393_v38 = vld [vmem:[%s1756_s30 + $0x68] sm:$0xff] }
  0x6d   : > { %833 = vmatpush.bf16.msra.mxu1 %v1395_v34  ;;  %1436 = vmatpush.bf16.msra.mxu3 %v1395_v34  ;;  %v1384_v39 = vld [vmem:[%s1756_s30 + $0x20] sm:$0xff]  ;;  %v1383_v41 = vld [vmem:[%s1756_s30 + $0x18] sm:$0xff]  ;;  %v1382_v43 = vld [vmem:[%s1756_s30 + $0x10] sm:$0xff] }
  0x6e   : > { %v1392_v40 = vld [vmem:[%s1756_s30 + $0x60] sm:$0xff]  ;;  %v1391_v42 = vld [vmem:[%s1756_s30 + $0x58] sm:$0xff]  ;;  %v1390_v44 = vld [vmem:[%s1756_s30 + $0x50] sm:$0xff] }
  0x6f   : > { %v1381_v45 = vld [vmem:[%s1756_s30 + $0x8] sm:$0xff]  ;;  %v1380_v48 = vld [vmem:[%s1756_s30] sm:$0xff]  ;;  %v1399_v62 = vld [vmem:[%s1717_s26 + $0x14] sm:$0xf0] }
  0x70   : > { %745 = vmatpush.bf16.msra.mxu0 %v1386_v35  ;;  %1429 = vmatpush.bf16.msra.mxu2 %v1386_v35  ;;  %v1389_v46 = vld [vmem:[%s1756_s30 + $0x48] sm:$0xff]  ;;  %v1388_v51 = vld [vmem:[%s1756_s30 + $0x40] sm:$0xff]  ;;  %v1259_v63 = vld [vmem:[%s1717_s26 + $0x90] sm:$0xf]  ;;  %v1196_v5 = vor.u32 %v1399_v62, %v1195_v61 }
  0x71   : > { %834 = vmatpush.bf16.msra.mxu1 %v1394_v36  ;;  %1437 = vmatpush.bf16.msra.mxu3 %v1394_v36  ;;  %v1415_v0 = vld [vmem:[%s1717_s26 + $0x94] sm:$0xf0]  ;;  %v1398_v1 = vld [vmem:[%s1717_s26 + $0x14] sm:$0xf]  ;;  %v1197_v2 = vld [vmem:[%s1717_s26 + $0x18] sm:$0xf0] }
  0x72   : > { %v1414_v3 = vld [vmem:[%s1717_s26 + $0x94] sm:$0xf]  ;;  %v1261_v4 = vld [vmem:[%s1717_s26 + $0x98] sm:$0xf0]  ;;  %v1260_v6 = vor.u32 %v1415_v0, %v1259_v63  ;;  %v1200_v7 = vor.u32 %v1398_v1, %v1197_v2  ;;  %v1203_v9 = vld [vmem:[%s1717_s26 + $0x20] sm:$0xf] }
  0x73   : > { %v1264_v8 = vor.u32 %v1414_v3, %v1261_v4  ;;  %v1401_v10 = vld [vmem:[%s1717_s26 + $0x24] sm:$0xf0]  ;;  %v1267_v11 = vld [vmem:[%s1717_s26 + $0xa0] sm:$0xf]  ;;  %v1400_v13 = vld [vmem:[%s1717_s26 + $0x24] sm:$0xf] }
  0x74   : > { %746 = vmatpush.bf16.msra.mxu0 %v1385_v37  ;;  %1430 = vmatpush.bf16.msra.mxu2 %v1385_v37  ;;  %v1417_v12 = vld [vmem:[%s1717_s26 + $0xa4] sm:$0xf0]  ;;  %v1205_v14 = vld [vmem:[%s1717_s26 + $0x28] sm:$0xf0]  ;;  %v1416_v15 = vld [vmem:[%s1717_s26 + $0xa4] sm:$0xf]  ;;  %v1204_v17 = vor.u32 %v1401_v10, %v1203_v9 }
  0x75   : > { %835 = vmatpush.bf16.msra.mxu1 %v1393_v38  ;;  %1438 = vmatpush.bf16.msra.mxu3 %v1393_v38  ;;  %v1269_v16 = vld [vmem:[%s1717_s26 + $0xa8] sm:$0xf0]  ;;  %v1268_v18 = vor.u32 %v1417_v12, %v1267_v11  ;;  %v1208_v19 = vor.u32 %v1400_v13, %v1205_v14  ;;  %v1211_v21 = vld [vmem:[%s1717_s26 + $0x30] sm:$0xf]  ;;  %v1403_v22 = vld [vmem:[%s1717_s26 + $0x34] sm:$0xf0] }
  0x76   : > { %v1272_v20 = vor.u32 %v1416_v15, %v1269_v16  ;;  %v1275_v23 = vld [vmem:[%s1717_s26 + $0xb0] sm:$0xf]  ;;  %v1419_v24 = vld [vmem:[%s1717_s26 + $0xb4] sm:$0xf0]  ;;  %v1402_v25 = vld [vmem:[%s1717_s26 + $0x34] sm:$0xf]  ;;  %v1212_v29 = vor.u32 %v1403_v22, %v1211_v21 }
  0x77   : > { %v1213_v26 = vld [vmem:[%s1717_s26 + $0x38] sm:$0xf0]  ;;  %v1418_v27 = vld [vmem:[%s1717_s26 + $0xb4] sm:$0xf]  ;;  %v1276_v30 = vor.u32 %v1419_v24, %v1275_v23  ;;  %v1219_v33 = vld [vmem:[%s1717_s26 + $0x40] sm:$0xf] }
  0x78   : > { %747 = vmatpush.bf16.msra.mxu0 %v1384_v39  ;;  %1431 = vmatpush.bf16.msra.mxu2 %v1384_v39  ;;  %v1277_v28 = vld [vmem:[%s1717_s26 + $0xb8] sm:$0xf0]  ;;  %v1216_v31 = vor.u32 %v1402_v25, %v1213_v26  ;;  %v1405_v34 = vld [vmem:[%s1717_s26 + $0x44] sm:$0xf0]  ;;  %v1283_v35 = vld [vmem:[%s1717_s26 + $0xc0] sm:$0xf] }
  0x79   : > { %836 = vmatpush.bf16.msra.mxu1 %v1392_v40  ;;  %1439 = vmatpush.bf16.msra.mxu3 %v1392_v40  ;;  %v1280_v32 = vor.u32 %v1418_v27, %v1277_v28  ;;  %v1421_v36 = vld [vmem:[%s1717_s26 + $0xc4] sm:$0xf0]  ;;  %v1404_v37 = vld [vmem:[%s1717_s26 + $0x44] sm:$0xf]  ;;  %v1221_v38 = vld [vmem:[%s1717_s26 + $0x48] sm:$0xf0] }
  0x7a   : > { %v1420_v39 = vld [vmem:[%s1717_s26 + $0xc4] sm:$0xf]  ;;  %v1285_v40 = vld [vmem:[%s1717_s26 + $0xc8] sm:$0xf0]  ;;  %v1291_v47 = vld [vmem:[%s1717_s26 + $0xd0] sm:$0xf] }
  0x7b   : > { %v1406_v49 = vld [vmem:[%s1717_s26 + $0x54] sm:$0xf]  ;;  %v1229_v50 = vld [vmem:[%s1717_s26 + $0x58] sm:$0xf0]  ;;  %v1408_v61 = vld [vmem:[%s1717_s26 + $0x64] sm:$0xf] }
  0x7c   : > { %748 = vmatpush.bf16.msra.mxu0 %v1383_v41  ;;  %1432 = vmatpush.bf16.msra.mxu2 %v1383_v41  ;;  %v1220_v41 = vor.u32 %v1405_v34, %v1219_v33  ;;  %v1293_v52 = vld [vmem:[%s1717_s26 + $0xd8] sm:$0xf0]  ;;  %v1232_v55 = vor.u32 %v1406_v49, %v1229_v50  ;;  %v1237_v62 = vld [vmem:[%s1717_s26 + $0x68] sm:$0xf0]  ;;  %v1424_v63 = vld [vmem:[%s1717_s26 + $0xe4] sm:$0xf] }
  0x7d   : > { %837 = vmatpush.bf16.msra.mxu1 %v1391_v42  ;;  %1440 = vmatpush.bf16.msra.mxu3 %v1391_v42  ;;  %v1284_v42 = vor.u32 %v1421_v36, %v1283_v35  ;;  %v1301_v0 = vld [vmem:[%s1717_s26 + $0xe8] sm:$0xf0]  ;;  %v1240_v3 = vor.u32 %v1408_v61, %v1237_v62  ;;  %v1410_v9 = vld [vmem:[%s1717_s26 + $0x74] sm:$0xf]  ;;  %v1245_v10 = vld [vmem:[%s1717_s26 + $0x78] sm:$0xf0] }
  0x7e   : > { %v1304_v4 = vor.u32 %v1424_v63, %v1301_v0  ;;  %v1426_v11 = vld [vmem:[%s1717_s26 + $0xf4] sm:$0xf]  ;;  %v1309_v12 = vld [vmem:[%s1717_s26 + $0xf8] sm:$0xf0]  ;;  %v1248_v15 = vor.u32 %v1410_v9, %v1245_v10  ;;  %v440_v23 = vld [vmem:[%s1715_s24 + $0x80] sm:$0xff] }
  0x7f   : > { %v1312_v16 = vor.u32 %v1426_v11, %v1309_v12  ;;  %v425_v27 = vld [vmem:[%s1715_s24 + $0x8] sm:$0xff]  ;;  %v444_v63 = vld [vmem:[%s1715_s24 + $0xa0] sm:$0xff] }
  0x80   : > { %749 = vmatpush.bf16.msra.mxu0 %v1382_v43  ;;  %1433 = vmatpush.bf16.msra.mxu2 %v1382_v43  ;;  %v1224_v43 = vor.u32 %v1404_v37, %v1221_v38  ;;  %v441_v33 = vld [vmem:[%s1715_s24 + $0x88] sm:$0xff]  ;;  %v426_v37 = vld [vmem:[%s1715_s24 + $0x10] sm:$0xff] }
  0x81   : > { %838 = vmatpush.bf16.msra.mxu1 %v1390_v44  ;;  %1441 = vmatpush.bf16.msra.mxu3 %v1390_v44  ;;  %v1288_v44 = vor.u32 %v1420_v39, %v1285_v40  ;;  %v445_v9 = vld [vmem:[%s1715_s24 + $0xa8] sm:$0xff] }
  0x84   : > { %750 = vmatpush.bf16.msra.mxu0 %v1381_v45  ;;  %1434 = vmatpush.bf16.msra.mxu2 %v1381_v45  ;;  %v1227_v45 = vld [vmem:[%s1717_s26 + $0x50] sm:$0xf] }
  0x85   : > { %839 = vmatpush.bf16.msra.mxu1 %v1389_v46  ;;  %1442 = vmatpush.bf16.msra.mxu3 %v1389_v46  ;;  %v1407_v46 = vld [vmem:[%s1717_s26 + $0x54] sm:$0xf0] }
  0x86   : > { %v1228_v53 = vor.u32 %v1407_v46, %v1227_v45 }
  0x88   : > { %751 = vmatpush.bf16.msra.mxu0 %v1380_v48  ;;  %1435 = vmatpush.bf16.msra.mxu2 %v1380_v48  ;;  %v1423_v48 = vld [vmem:[%s1717_s26 + $0xd4] sm:$0xf0] }
  0x89   : > { %840 = vmatpush.bf16.msra.mxu1 %v1388_v51  ;;  %1443 = vmatpush.bf16.msra.mxu3 %v1388_v51  ;;  %v1422_v51 = vld [vmem:[%s1717_s26 + $0xd4] sm:$0xf]  ;;  %v1292_v54 = vor.u32 %v1423_v48, %v1291_v47  ;;  %v427_v47 = vld [vmem:[%s1715_s24 + $0x18] sm:$0xff] }
  0x8a   : > { %v1296_v56 = vor.u32 %v1422_v51, %v1293_v52 }
  0x8b   : > { %752 = vmatmul.bf16.vlgmr.msra.gmra.mxu0 %v1188_v57  ;;  %792 = vmatmul.bf16.vlgmr.msra.gmra.mxu2 %v1252_v58  ;;  %v1235_v57 = vld [vmem:[%s1717_s26 + $0x60] sm:$0xf]  ;;  %v1409_v58 = vld [vmem:[%s1717_s26 + $0x64] sm:$0xf0] }
  0x8c   : > { %841 = vmatmul.bf16.vlgmr.msra.gmra.mxu1 %v1192_v59  ;;  %881 = vmatmul.bf16.vlgmr.msra.gmra.mxu3 %v1256_v60  ;;  %v1299_v59 = vld [vmem:[%s1717_s26 + $0xe0] sm:$0xf]  ;;  %v1425_v60 = vld [vmem:[%s1717_s26 + $0xe4] sm:$0xf0]  ;;  %v1236_v1 = vor.u32 %v1409_v58, %v1235_v57 }
  0x8d   : > { %v1300_v2 = vor.u32 %v1425_v60, %v1299_v59  ;;  %v428_v57 = vld [vmem:[%s1715_s24 + $0x20] sm:$0xff] }
  0x9b   : > { %757 = vmatmul.bf16.gmra.mxu0 %v1196_v5  ;;  %797 = vmatmul.bf16.gmra.mxu2 %v1260_v6  ;;  %v1243_v5 = vld [vmem:[%s1717_s26 + $0x70] sm:$0xf]  ;;  %v1411_v6 = vld [vmem:[%s1717_s26 + $0x74] sm:$0xf0] }
  0x9c   : > { %846 = vmatmul.bf16.gmra.mxu1 %v1200_v7  ;;  %886 = vmatmul.bf16.gmra.mxu3 %v1264_v8  ;;  %v1307_v7 = vld [vmem:[%s1717_s26 + $0xf0] sm:$0xf]  ;;  %v1427_v8 = vld [vmem:[%s1717_s26 + $0xf4] sm:$0xf0]  ;;  %v1244_v13 = vor.u32 %v1411_v6, %v1243_v5 }
  0x9d   : > { %v1308_v14 = vor.u32 %v1427_v8, %v1307_v7 }
  0xab   : > { %762 = vmatmul.bf16.gmra.mxu0 %v1204_v17  ;;  %802 = vmatmul.bf16.gmra.mxu2 %v1268_v18  ;;  %v424_v18 = vld [vmem:[%s1715_s24] sm:$0xff] }
  0xac   : > { %851 = vmatmul.bf16.gmra.mxu1 %v1208_v19  ;;  %891 = vmatmul.bf16.gmra.mxu3 %v1272_v20 }
  0xbb   : > { %767 = vmatmul.bf16.gmra.mxu0 %v1212_v29  ;;  %807 = vmatmul.bf16.gmra.mxu2 %v1276_v30 }
  0xbc   : > { %856 = vmatmul.bf16.gmra.mxu1 %v1216_v31  ;;  %896 = vmatmul.bf16.gmra.mxu3 %v1280_v32 }
  0xcb   : > { %772 = vmatmul.bf16.gmra.mxu0 %v1220_v41  ;;  %812 = vmatmul.bf16.gmra.mxu2 %v1284_v42 }
  0xcc   : > { %861 = vmatmul.bf16.gmra.mxu1 %v1224_v43  ;;  %901 = vmatmul.bf16.gmra.mxu3 %v1288_v44  ;;  %v442_v43 = vld [vmem:[%s1715_s24 + $0x90] sm:$0xff] }
  0xdb   : > { %777 = vmatmul.bf16.gmra.mxu0 %v1228_v53  ;;  %817 = vmatmul.bf16.gmra.mxu2 %v1292_v54  ;;  %v443_v53 = vld [vmem:[%s1715_s24 + $0x98] sm:$0xff] }
  0xdc   : > { %866 = vmatmul.bf16.gmra.mxu1 %v1232_v55  ;;  %906 = vmatmul.bf16.gmra.mxu3 %v1296_v56 }
  0xeb   : > { %782 = vmatmul.bf16.gmra.mxu0 %v1236_v1  ;;  %822 = vmatmul.bf16.gmra.mxu2 %v1300_v2 }
  0xec   : > { %871 = vmatmul.bf16.gmra.mxu1 %v1240_v3  ;;  %911 = vmatmul.bf16.gmra.mxu3 %v1304_v4  ;;  %v429_v3 = vld [vmem:[%s1715_s24 + $0x28] sm:$0xff] }
  0xfb   : > { %787 = vmatmul.bf16.gmra.mxu0 %v1244_v13  ;;  %827 = vmatmul.bf16.gmra.mxu2 %v1308_v14  ;;  %v430_v13 = vld [vmem:[%s1715_s24 + $0x30] sm:$0xff] }
  0xfc   : > { %876 = vmatmul.bf16.gmra.mxu1 %v1248_v15  ;;  %916 = vmatmul.bf16.gmra.mxu3 %v1312_v16 }
 0x108   : > { %v753_v17 = vpop.f32.mrf.mxu0 }
 0x109   : > { %v842_v19 = vpop.f32.mrf.mxu1 }
 0x10a   : > { %v843_v20 = vadd.f32 %v842_v19, %v753_v17  ;;  %v446_v19 = vld [vmem:[%s1715_s24 + $0xb0] sm:$0xff] }
 0x10c   : > { %v922_v21 = vadd.f32 %v843_v20, %v424_v18 }
 0x10e   : > { %954 = vst [vmem:[%s1715_s24] sm:$0xff] %v922_v21  ;;  %v793_v22 = vpop.f32.mrf.mxu2 }
 0x10f   : > { %v882_v24 = vpop.f32.mrf.mxu3 }
 0x110   : > { %v883_v25 = vadd.f32 %v882_v24, %v793_v22  ;;  %v755_v26 = vpop.f32.mrf.mxu0 }
 0x111   : > { %v844_v28 = vpop.f32.mrf.mxu1 }
 0x112   : > { %v938_v29 = vadd.f32 %v883_v25, %v440_v23  ;;  %v845_v30 = vadd.f32 %v844_v28, %v755_v26  ;;  %v431_v23 = vld [vmem:[%s1715_s24 + $0x38] sm:$0xff] }
 0x114   : > { %970 = vst [vmem:[%s1715_s24 + $0x80] sm:$0xff] %v938_v29  ;;  %v923_v31 = vadd.f32 %v845_v30, %v425_v27  ;;  %v447_v29 = vld [vmem:[%s1715_s24 + $0xb8] sm:$0xff] }
 0x116   : > { %955 = vst [vmem:[%s1715_s24 + $0x8] sm:$0xff] %v923_v31  ;;  %v795_v32 = vpop.f32.mrf.mxu2 }
 0x117   : > { %v884_v34 = vpop.f32.mrf.mxu3 }
 0x118   : > { %v885_v35 = vadd.f32 %v884_v34, %v795_v32  ;;  %v758_v36 = vpop.f32.mrf.mxu0 }
 0x119   : > { %v847_v38 = vpop.f32.mrf.mxu1 }
 0x11a   : > { %v939_v39 = vadd.f32 %v885_v35, %v441_v33  ;;  %v848_v40 = vadd.f32 %v847_v38, %v758_v36  ;;  %v432_v33 = vld [vmem:[%s1715_s24 + $0x40] sm:$0xff] }
 0x11c   : > { %971 = vst [vmem:[%s1715_s24 + $0x88] sm:$0xff] %v939_v39  ;;  %v924_v41 = vadd.f32 %v848_v40, %v426_v37  ;;  %v448_v39 = vld [vmem:[%s1715_s24 + $0xc0] sm:$0xff] }
 0x11e   : > { %956 = vst [vmem:[%s1715_s24 + $0x10] sm:$0xff] %v924_v41  ;;  %v798_v42 = vpop.f32.mrf.mxu2 }
 0x11f   : > { %v887_v44 = vpop.f32.mrf.mxu3 }
 0x120   : > { %v888_v45 = vadd.f32 %v887_v44, %v798_v42  ;;  %v760_v46 = vpop.f32.mrf.mxu0 }
 0x121   : > { %v849_v48 = vpop.f32.mrf.mxu1 }
 0x122   : > { %v940_v49 = vadd.f32 %v888_v45, %v442_v43  ;;  %v850_v50 = vadd.f32 %v849_v48, %v760_v46  ;;  %v433_v43 = vld [vmem:[%s1715_s24 + $0x48] sm:$0xff] }
 0x124   : > { %972 = vst [vmem:[%s1715_s24 + $0x90] sm:$0xff] %v940_v49  ;;  %v925_v51 = vadd.f32 %v850_v50, %v427_v47  ;;  %v449_v49 = vld [vmem:[%s1715_s24 + $0xc8] sm:$0xff] }
 0x126   : > { %957 = vst [vmem:[%s1715_s24 + $0x18] sm:$0xff] %v925_v51  ;;  %v800_v52 = vpop.f32.mrf.mxu2 }
 0x127   : > { %v889_v54 = vpop.f32.mrf.mxu3 }
 0x128   : > { %v890_v55 = vadd.f32 %v889_v54, %v800_v52  ;;  %v763_v56 = vpop.f32.mrf.mxu0 }
 0x129   : > { %v852_v58 = vpop.f32.mrf.mxu1 }
 0x12a   : > { %v941_v59 = vadd.f32 %v890_v55, %v443_v53  ;;  %v853_v60 = vadd.f32 %v852_v58, %v763_v56  ;;  %v434_v53 = vld [vmem:[%s1715_s24 + $0x50] sm:$0xff] }
 0x12c   : > { %973 = vst [vmem:[%s1715_s24 + $0x98] sm:$0xff] %v941_v59  ;;  %v926_v61 = vadd.f32 %v853_v60, %v428_v57  ;;  %v450_v59 = vld [vmem:[%s1715_s24 + $0xd0] sm:$0xff] }
 0x12e   : > { %958 = vst [vmem:[%s1715_s24 + $0x20] sm:$0xff] %v926_v61  ;;  %v803_v62 = vpop.f32.mrf.mxu2 }
 0x12f   : > { %v892_v0 = vpop.f32.mrf.mxu3 }
 0x130   : > { %v893_v1 = vadd.f32 %v892_v0, %v803_v62  ;;  %v765_v2 = vpop.f32.mrf.mxu0 }
 0x131   : > { %v854_v4 = vpop.f32.mrf.mxu1 }
 0x132   : > { %v942_v5 = vadd.f32 %v893_v1, %v444_v63  ;;  %v855_v6 = vadd.f32 %v854_v4, %v765_v2  ;;  %v435_v63 = vld [vmem:[%s1715_s24 + $0x58] sm:$0xff] }
 0x134   : > { %974 = vst [vmem:[%s1715_s24 + $0xa0] sm:$0xff] %v942_v5  ;;  %v927_v7 = vadd.f32 %v855_v6, %v429_v3  ;;  %v451_v5 = vld [vmem:[%s1715_s24 + $0xd8] sm:$0xff] }
 0x136   : > { %959 = vst [vmem:[%s1715_s24 + $0x28] sm:$0xff] %v927_v7  ;;  %v805_v8 = vpop.f32.mrf.mxu2 }
 0x137   : > { %v894_v10 = vpop.f32.mrf.mxu3 }
 0x138   : > { %v895_v11 = vadd.f32 %v894_v10, %v805_v8  ;;  %v768_v12 = vpop.f32.mrf.mxu0 }
 0x139   : > { %v857_v14 = vpop.f32.mrf.mxu1 }
 0x13a   : > { %v943_v15 = vadd.f32 %v895_v11, %v445_v9  ;;  %v858_v16 = vadd.f32 %v857_v14, %v768_v12  ;;  %v436_v9 = vld [vmem:[%s1715_s24 + $0x60] sm:$0xff] }
 0x13c   : > { %975 = vst [vmem:[%s1715_s24 + $0xa8] sm:$0xff] %v943_v15  ;;  %v928_v17 = vadd.f32 %v858_v16, %v430_v13  ;;  %v452_v15 = vld [vmem:[%s1715_s24 + $0xe0] sm:$0xff] }
 0x13e   : > { %960 = vst [vmem:[%s1715_s24 + $0x30] sm:$0xff] %v928_v17  ;;  %v808_v18 = vpop.f32.mrf.mxu2 }
 0x13f   : > { %v897_v20 = vpop.f32.mrf.mxu3 }
 0x140   : > { %v898_v21 = vadd.f32 %v897_v20, %v808_v18  ;;  %v770_v22 = vpop.f32.mrf.mxu0 }
 0x141   : > { %v859_v24 = vpop.f32.mrf.mxu1 }
 0x142   : > { %v944_v25 = vadd.f32 %v898_v21, %v446_v19  ;;  %v860_v26 = vadd.f32 %v859_v24, %v770_v22  ;;  %v437_v19 = vld [vmem:[%s1715_s24 + $0x68] sm:$0xff] }
 0x144   : > { %976 = vst [vmem:[%s1715_s24 + $0xb0] sm:$0xff] %v944_v25  ;;  %v929_v27 = vadd.f32 %v860_v26, %v431_v23  ;;  %v453_v25 = vld [vmem:[%s1715_s24 + $0xe8] sm:$0xff] }
 0x146   : > { %961 = vst [vmem:[%s1715_s24 + $0x38] sm:$0xff] %v929_v27  ;;  %v810_v28 = vpop.f32.mrf.mxu2 }
 0x147   : > { %v899_v30 = vpop.f32.mrf.mxu3 }
 0x148   : > { %v900_v31 = vadd.f32 %v899_v30, %v810_v28  ;;  %v773_v32 = vpop.f32.mrf.mxu0 }
 0x149   : > { %v862_v34 = vpop.f32.mrf.mxu1 }
 0x14a   : > { %v945_v35 = vadd.f32 %v900_v31, %v447_v29  ;;  %v863_v36 = vadd.f32 %v862_v34, %v773_v32  ;;  %v438_v29 = vld [vmem:[%s1715_s24 + $0x70] sm:$0xff] }
 0x14c   : > { %977 = vst [vmem:[%s1715_s24 + $0xb8] sm:$0xff] %v945_v35  ;;  %v930_v37 = vadd.f32 %v863_v36, %v432_v33  ;;  %v454_v35 = vld [vmem:[%s1715_s24 + $0xf0] sm:$0xff] }
 0x14e   : > { %962 = vst [vmem:[%s1715_s24 + $0x40] sm:$0xff] %v930_v37  ;;  %v813_v38 = vpop.f32.mrf.mxu2 }
 0x14f   : > { %v902_v40 = vpop.f32.mrf.mxu3 }
 0x150   : > { %v903_v41 = vadd.f32 %v902_v40, %v813_v38  ;;  %v775_v42 = vpop.f32.mrf.mxu0 }
 0x151   : > { %v864_v44 = vpop.f32.mrf.mxu1 }
 0x152   : > { %v946_v45 = vadd.f32 %v903_v41, %v448_v39  ;;  %v865_v46 = vadd.f32 %v864_v44, %v775_v42  ;;  %v439_v39 = vld [vmem:[%s1715_s24 + $0x78] sm:$0xff] }
 0x154   : > { %978 = vst [vmem:[%s1715_s24 + $0xc0] sm:$0xff] %v946_v45  ;;  %v931_v47 = vadd.f32 %v865_v46, %v433_v43  ;;  %v455_v45 = vld [vmem:[%s1715_s24 + $0xf8] sm:$0xff] }
 0x156   : > { %963 = vst [vmem:[%s1715_s24 + $0x48] sm:$0xff] %v931_v47  ;;  %v815_v48 = vpop.f32.mrf.mxu2 }
 0x157   : > { %v904_v50 = vpop.f32.mrf.mxu3 }
 0x158   : > { %v905_v51 = vadd.f32 %v904_v50, %v815_v48  ;;  %v778_v52 = vpop.f32.mrf.mxu0 }
 0x159   : > { %v867_v54 = vpop.f32.mrf.mxu1 }
 0x15a   : > { %v947_v55 = vadd.f32 %v905_v51, %v449_v49  ;;  %v868_v56 = vadd.f32 %v867_v54, %v778_v52 }
 0x15c   : > { %979 = vst [vmem:[%s1715_s24 + $0xc8] sm:$0xff] %v947_v55  ;;  %v932_v57 = vadd.f32 %v868_v56, %v434_v53 }
 0x15e   : > { %964 = vst [vmem:[%s1715_s24 + $0x50] sm:$0xff] %v932_v57  ;;  %v818_v58 = vpop.f32.mrf.mxu2 }
 0x15f   : > { %v907_v60 = vpop.f32.mrf.mxu3 }
 0x160   : > { %v908_v61 = vadd.f32 %v907_v60, %v818_v58  ;;  %v780_v62 = vpop.f32.mrf.mxu0 }
 0x161   : > { %v869_v0 = vpop.f32.mrf.mxu1 }
 0x162   : > { %v948_v1 = vadd.f32 %v908_v61, %v450_v59  ;;  %v870_v2 = vadd.f32 %v869_v0, %v780_v62 }
 0x164   : > { %980 = vst [vmem:[%s1715_s24 + $0xd0] sm:$0xff] %v948_v1  ;;  %v933_v3 = vadd.f32 %v870_v2, %v435_v63 }
 0x166   : > { %965 = vst [vmem:[%s1715_s24 + $0x58] sm:$0xff] %v933_v3  ;;  %v820_v4 = vpop.f32.mrf.mxu2 }
 0x167   : > { %v909_v6 = vpop.f32.mrf.mxu3 }
 0x168   : > { %v910_v7 = vadd.f32 %v909_v6, %v820_v4  ;;  %v783_v8 = vpop.f32.mrf.mxu0 }
 0x169   : > { %v872_v10 = vpop.f32.mrf.mxu1 }
 0x16a   : > { %v949_v11 = vadd.f32 %v910_v7, %v451_v5  ;;  %v873_v12 = vadd.f32 %v872_v10, %v783_v8 }
 0x16c   : > { %981 = vst [vmem:[%s1715_s24 + $0xd8] sm:$0xff] %v949_v11  ;;  %v934_v13 = vadd.f32 %v873_v12, %v436_v9 }
 0x16e   : > { %966 = vst [vmem:[%s1715_s24 + $0x60] sm:$0xff] %v934_v13  ;;  %v823_v14 = vpop.f32.mrf.mxu2 }
 0x16f   : > { %v912_v16 = vpop.f32.mrf.mxu3 }
 0x170   : > { %v913_v17 = vadd.f32 %v912_v16, %v823_v14  ;;  %v785_v18 = vpop.f32.mrf.mxu0 }
 0x171   : > { %v874_v20 = vpop.f32.mrf.mxu1 }
 0x172   : > { %v950_v21 = vadd.f32 %v913_v17, %v452_v15  ;;  %v875_v22 = vadd.f32 %v874_v20, %v785_v18 }
 0x174   : > { %982 = vst [vmem:[%s1715_s24 + $0xe0] sm:$0xff] %v950_v21  ;;  %v935_v23 = vadd.f32 %v875_v22, %v437_v19 }
 0x176   : > { %967 = vst [vmem:[%s1715_s24 + $0x68] sm:$0xff] %v935_v23  ;;  %v825_v24 = vpop.f32.mrf.mxu2 }
 0x177   : > { %v914_v26 = vpop.f32.mrf.mxu3 }
 0x178   : > { %v915_v27 = vadd.f32 %v914_v26, %v825_v24  ;;  %v788_v28 = vpop.f32.mrf.mxu0 }
 0x179   : > { %v877_v30 = vpop.f32.mrf.mxu1 }
 0x17a   : > { %v951_v31 = vadd.f32 %v915_v27, %v453_v25  ;;  %v878_v32 = vadd.f32 %v877_v30, %v788_v28 }
 0x17c   : > { %983 = vst [vmem:[%s1715_s24 + $0xe8] sm:$0xff] %v951_v31  ;;  %v936_v33 = vadd.f32 %v878_v32, %v438_v29 }
 0x17e   : > { %968 = vst [vmem:[%s1715_s24 + $0x70] sm:$0xff] %v936_v33  ;;  %v828_v34 = vpop.f32.mrf.mxu2 }
 0x17f   : > { %v917_v36 = vpop.f32.mrf.mxu3 }
 0x180   : > { %v918_v37 = vadd.f32 %v917_v36, %v828_v34  ;;  %v790_v38 = vpop.f32.mrf.mxu0 }
 0x181   : > { %v879_v40 = vpop.f32.mrf.mxu1 }
 0x182   : > { %v952_v41 = vadd.f32 %v918_v37, %v454_v35  ;;  %v880_v42 = vadd.f32 %v879_v40, %v790_v38 }
 0x184   : > { %984 = vst [vmem:[%s1715_s24 + $0xf0] sm:$0xff] %v952_v41  ;;  %v937_v43 = vadd.f32 %v880_v42, %v439_v39 }
 0x186   : > { %969 = vst [vmem:[%s1715_s24 + $0x78] sm:$0xff] %v937_v43  ;;  %v830_v44 = vpop.f32.mrf.mxu2 }
 0x187   : > { %v919_v46 = vpop.f32.mrf.mxu3 }
 0x188   : > { %v920_v47 = vadd.f32 %v919_v46, %v830_v44  ;;  %989 = sbr.rel (%p1377_p12) target bundleno = 433 (0x1b1), region = 78 }
 0x18a   : > { %v953_v48 = vadd.f32 %v920_v47, %v455_v45 }
 0x18c   : > { %985 = vst [vmem:[%s1715_s24 + $0xf8] sm:$0xff] %v953_v48 }
 0x18d   : > { %v990_v49 = vld [vmem:[%s1715_s24] sm:$0xff]  ;;  %v991_v51 = vld [vmem:[%s1715_s24 + $0x8] sm:$0xff]  ;;  %v992_v52 = vld [vmem:[%s1715_s24 + $0x10] sm:$0xff] }
 0x18e   : > { %v1907_v50 = vld [vmem:[%s2027_s2] ss:$0 sm:$0xff]  ;;  %v993_v53 = vld [vmem:[%s1715_s24 + $0x18] sm:$0xff]  ;;  %v995_v58 = vld [vmem:[%s1715_s24 + $0x28] sm:$0xff] }
 0x18f   : > { %v1026_v54 = vadd.f32 %v1907_v50, %v990_v49  ;;  %v1027_v55 = vadd.f32 %v1907_v50, %v991_v51  ;;  %v1028_v56 = vadd.f32 %v1907_v50, %v992_v52  ;;  %v994_v57 = vld [vmem:[%s1715_s24 + $0x20] sm:$0xff]  ;;  %v1029_v59 = vadd.f32 %v1907_v50, %v993_v53  ;;  %v996_v60 = vld [vmem:[%s1715_s24 + $0x30] sm:$0xff]  ;;  %v997_v62 = vld [vmem:[%s1715_s24 + $0x38] sm:$0xff] }
 0x190   : > { %v1030_v61 = vadd.f32 %v1907_v50, %v994_v57  ;;  %v1031_v63 = vadd.f32 %v1907_v50, %v995_v58  ;;  %v998_v0 = vld [vmem:[%s1715_s24 + $0x40] sm:$0xff]  ;;  %v1032_v1 = vadd.f32 %v1907_v50, %v996_v60  ;;  %v999_v2 = vld [vmem:[%s1715_s24 + $0x48] sm:$0xff]  ;;  %v1033_v3 = vadd.f32 %v1907_v50, %v997_v62  ;;  %v1000_v4 = vld [vmem:[%s1715_s24 + $0x50] sm:$0xff] }
 0x191   : > { %1058 = vst [vmem:[%s1715_s24] sm:$0xff] %v1026_v54  ;;  %v1034_v5 = vadd.f32 %v1907_v50, %v998_v0  ;;  %v1001_v6 = vld [vmem:[%s1715_s24 + $0x58] sm:$0xff]  ;;  %v1035_v7 = vadd.f32 %v1907_v50, %v999_v2  ;;  %v1002_v8 = vld [vmem:[%s1715_s24 + $0x60] sm:$0xff]  ;;  %v1036_v9 = vadd.f32 %v1907_v50, %v1000_v4  ;;  %v1003_v10 = vld [vmem:[%s1715_s24 + $0x68] sm:$0xff] }
 0x192   : > { %1059 = vst [vmem:[%s1715_s24 + $0x8] sm:$0xff] %v1027_v55  ;;  %v1037_v11 = vadd.f32 %v1907_v50, %v1001_v6  ;;  %v1004_v12 = vld [vmem:[%s1715_s24 + $0x70] sm:$0xff]  ;;  %v1038_v13 = vadd.f32 %v1907_v50, %v1002_v8  ;;  %v1005_v14 = vld [vmem:[%s1715_s24 + $0x78] sm:$0xff]  ;;  %v1039_v15 = vadd.f32 %v1907_v50, %v1003_v10  ;;  %v1006_v16 = vld [vmem:[%s1715_s24 + $0x80] sm:$0xff] }
 0x193   : > { %1060 = vst [vmem:[%s1715_s24 + $0x10] sm:$0xff] %v1028_v56  ;;  %v1040_v17 = vadd.f32 %v1907_v50, %v1004_v12  ;;  %v1007_v18 = vld [vmem:[%s1715_s24 + $0x88] sm:$0xff]  ;;  %v1041_v19 = vadd.f32 %v1907_v50, %v1005_v14  ;;  %v1008_v20 = vld [vmem:[%s1715_s24 + $0x90] sm:$0xff]  ;;  %v1042_v21 = vadd.f32 %v1907_v50, %v1006_v16  ;;  %v1009_v22 = vld [vmem:[%s1715_s24 + $0x98] sm:$0xff] }
 0x194   : > { %1061 = vst [vmem:[%s1715_s24 + $0x18] sm:$0xff] %v1029_v59  ;;  %v1043_v23 = vadd.f32 %v1907_v50, %v1007_v18  ;;  %v1010_v24 = vld [vmem:[%s1715_s24 + $0xa0] sm:$0xff]  ;;  %v1044_v25 = vadd.f32 %v1907_v50, %v1008_v20  ;;  %v1011_v26 = vld [vmem:[%s1715_s24 + $0xa8] sm:$0xff]  ;;  %v1045_v27 = vadd.f32 %v1907_v50, %v1009_v22  ;;  %v1012_v28 = vld [vmem:[%s1715_s24 + $0xb0] sm:$0xff] }
 0x195   : > { %1062 = vst [vmem:[%s1715_s24 + $0x20] sm:$0xff] %v1030_v61  ;;  %v1046_v29 = vadd.f32 %v1907_v50, %v1010_v24  ;;  %v1013_v30 = vld [vmem:[%s1715_s24 + $0xb8] sm:$0xff]  ;;  %v1047_v31 = vadd.f32 %v1907_v50, %v1011_v26  ;;  %v1014_v32 = vld [vmem:[%s1715_s24 + $0xc0] sm:$0xff]  ;;  %v1048_v33 = vadd.f32 %v1907_v50, %v1012_v28  ;;  %v1015_v34 = vld [vmem:[%s1715_s24 + $0xc8] sm:$0xff] }
 0x196   : > { %1063 = vst [vmem:[%s1715_s24 + $0x28] sm:$0xff] %v1031_v63  ;;  %v1049_v35 = vadd.f32 %v1907_v50, %v1013_v30  ;;  %v1016_v36 = vld [vmem:[%s1715_s24 + $0xd0] sm:$0xff]  ;;  %v1050_v37 = vadd.f32 %v1907_v50, %v1014_v32  ;;  %v1017_v38 = vld [vmem:[%s1715_s24 + $0xd8] sm:$0xff]  ;;  %v1051_v39 = vadd.f32 %v1907_v50, %v1015_v34  ;;  %v1018_v40 = vld [vmem:[%s1715_s24 + $0xe0] sm:$0xff] }
 0x197   : > { %1064 = vst [vmem:[%s1715_s24 + $0x30] sm:$0xff] %v1032_v1  ;;  %v1052_v41 = vadd.f32 %v1907_v50, %v1016_v36  ;;  %v1019_v42 = vld [vmem:[%s1715_s24 + $0xe8] sm:$0xff]  ;;  %v1053_v43 = vadd.f32 %v1907_v50, %v1017_v38  ;;  %v1020_v44 = vld [vmem:[%s1715_s24 + $0xf0] sm:$0xff]  ;;  %v1054_v45 = vadd.f32 %v1907_v50, %v1018_v40  ;;  %v1021_v46 = vld [vmem:[%s1715_s24 + $0xf8] sm:$0xff] }
 0x198   : > { %1065 = vst [vmem:[%s1715_s24 + $0x38] sm:$0xff] %v1033_v3  ;;  %v1055_v47 = vadd.f32 %v1907_v50, %v1019_v42  ;;  %v1056_v48 = vadd.f32 %v1907_v50, %v1020_v44  ;;  %v1057_v49 = vadd.f32 %v1907_v50, %v1021_v46 }
 0x199   : > { %1066 = vst [vmem:[%s1715_s24 + $0x40] sm:$0xff] %v1034_v5 }
 0x19a   : > { %1067 = vst [vmem:[%s1715_s24 + $0x48] sm:$0xff] %v1035_v7 }
 0x19b   : > { %1068 = vst [vmem:[%s1715_s24 + $0x50] sm:$0xff] %v1036_v9 }
 0x19c   : > { %1069 = vst [vmem:[%s1715_s24 + $0x58] sm:$0xff] %v1037_v11 }
 0x19d   : > { %1070 = vst [vmem:[%s1715_s24 + $0x60] sm:$0xff] %v1038_v13 }
 0x19e   : > { %1071 = vst [vmem:[%s1715_s24 + $0x68] sm:$0xff] %v1039_v15 }
 0x19f   : > { %1072 = vst [vmem:[%s1715_s24 + $0x70] sm:$0xff] %v1040_v17 }
 0x1a0   : > { %1073 = vst [vmem:[%s1715_s24 + $0x78] sm:$0xff] %v1041_v19 }
 0x1a1   : > { %1074 = vst [vmem:[%s1715_s24 + $0x80] sm:$0xff] %v1042_v21 }
 0x1a2   : > { %1075 = vst [vmem:[%s1715_s24 + $0x88] sm:$0xff] %v1043_v23 }
 0x1a3   : > { %1076 = vst [vmem:[%s1715_s24 + $0x90] sm:$0xff] %v1044_v25 }
 0x1a4   : > { %1077 = vst [vmem:[%s1715_s24 + $0x98] sm:$0xff] %v1045_v27 }
 0x1a5   : > { %1078 = vst [vmem:[%s1715_s24 + $0xa0] sm:$0xff] %v1046_v29 }
 0x1a6   : > { %1079 = vst [vmem:[%s1715_s24 + $0xa8] sm:$0xff] %v1047_v31 }
 0x1a7   : > { %1080 = vst [vmem:[%s1715_s24 + $0xb0] sm:$0xff] %v1048_v33 }
 0x1a8   : > { %1081 = vst [vmem:[%s1715_s24 + $0xb8] sm:$0xff] %v1049_v35 }
 0x1a9   : > { %1082 = vst [vmem:[%s1715_s24 + $0xc0] sm:$0xff] %v1050_v37 }
 0x1aa   : > { %1083 = vst [vmem:[%s1715_s24 + $0xc8] sm:$0xff] %v1051_v39 }
 0x1ab   : > { %1084 = vst [vmem:[%s1715_s24 + $0xd0] sm:$0xff] %v1052_v41 }
 0x1ac   : > { %1085 = vst [vmem:[%s1715_s24 + $0xd8] sm:$0xff] %v1053_v43 }
 0x1ad   : > { %1086 = vst [vmem:[%s1715_s24 + $0xe0] sm:$0xff] %v1054_v45 }
 0x1ae   : > { %1087 = vst [vmem:[%s1715_s24 + $0xe8] sm:$0xff] %v1055_v47 }
 0x1af   : > { %1088 = vst [vmem:[%s1715_s24 + $0xf0] sm:$0xff] %v1056_v48 }
 0x1b0   : > { %1089 = vst [vmem:[%s1715_s24 + $0xf8] sm:$0xff] %v1057_v49 }
 0x1b1 PF: > { %s13_s18 = sadd.s32 1, %s1557_s18   ;;  %s2029_s12 = smov %s1537_s13 }
 0x1b2   : > { %p10_p13 = scmp.ge.s32.totalorder %s13_s18, 11   ;;  %s2030_s13 = smov %s1631_s25 }
 0x1b3   : > { %s2031_s14 = smov %s1549_s16  ;;  %s2032_s15 = smov %s1553_s17 }
 0x1b4   : > { %s2033_s16 = smov %s2036_s19  ;;  %s2034_s17 = smov %s2040_s20 }
 0x1b5   :  { %12 = sbr.rel (!%p10_p13) target bundleno = 4 (0x4), region = 114 }

</bundles_post_ra>
